<compile_context>
chip_gen: v6e
topology: v6e:2x2x1
jax: 0.10.0
libtpu: 0.0.40
codegen_flags: <defaults>
</compile_context>

<pallas_src>
import jax
import jax.numpy as jnp
from jax.experimental import pallas as pl
from jax.experimental.pallas import tpu as pltpu

LANE = 128


def _round_up(n, m):
    return ((n + m - 1) // m) * m


def actor_kernel(x_ref, w1_ref, b1_ref, w2_ref, b2_ref, w3_ref, b3_ref, out_ref):
    # fc1 + tanh  (bf16 operands -> fp32 accumulate on the MXU)
    h1 = jnp.dot(x_ref[...], w1_ref[...], preferred_element_type=jnp.float32)
    h1 = jnp.tanh(h1 + b1_ref[...])                       # fp32 tanh (v5e-safe)
    # fc2 + tanh
    h2 = jnp.dot(h1.astype(w2_ref.dtype), w2_ref[...],
                 preferred_element_type=jnp.float32)
    h2 = jnp.tanh(h2 + b2_ref[...])
    # fc3 (output feature dim padded to 128 lanes; pad bias = -1e9 -> exp() == 0)
    logits = jnp.dot(h2.astype(w3_ref.dtype), w3_ref[...],
                     preferred_element_type=jnp.float32)
    logits = logits + b3_ref[...]
    # numerically stable softmax over the (padded) last dim
    m = jnp.max(logits, axis=-1, keepdims=True)
    e = jnp.exp(logits - m)
    denom = jnp.sum(e, axis=-1, keepdims=True)
    out_ref[...] = (e * pl.reciprocal(denom, approx=True)).astype(out_ref.dtype)


def actor_forward(x, params, *, block_b=512):
    """mu = softmax(fc3(tanh(fc2(tanh(fc1(x))))), axis=-1)."""
    w1, b1, w2, b2, w3, b3 = params
    B, num_inputs = x.shape
    hidden = w1.shape[1]
    num_outputs = w3.shape[1]

    # ---- batch tiling -------------------------------------------------------
    bt = min(block_b, _round_up(B, 8))          # rows per grid step
    Bp = _round_up(B, bt)                       # padded batch
    if Bp != B:
        x = jnp.pad(x, ((0, Bp - B), (0, 0)))

    # ---- lane-dense output: pad fc3 out features to a multiple of 128 -------
    out_cols = _round_up(num_outputs, LANE)
    pad_c = out_cols - num_outputs
    w3p = jnp.pad(w3, ((0, 0), (0, pad_c)))                       # zero weights
    b3p = jnp.concatenate(
        [b3, jnp.full((1, pad_c), -1e9, jnp.float32)], axis=1)    # -inf-ish bias

    # ---- bf16 matmul operands (fp32 accumulate inside the kernel) -----------
    x_bf = x.astype(jnp.bfloat16)
    w1_bf = w1.astype(jnp.bfloat16)
    w2_bf = w2.astype(jnp.bfloat16)
    w3_bf = w3p.astype(jnp.bfloat16)

    grid = (Bp // bt,)
    const = lambda shape: pl.BlockSpec(shape, lambda i: (0, 0))   # VMEM-resident

    out_padded = pl.pallas_call(
        actor_kernel,
        out_shape=jax.ShapeDtypeStruct((Bp, out_cols), jnp.float32),
        grid=grid,
        in_specs=[
            pl.BlockSpec((bt, num_inputs), lambda i: (i, 0)),     # x: batch-tiled
            const(w1_bf.shape), const(b1.shape),
            const(w2_bf.shape), const(b2.shape),
            const(w3_bf.shape), const(b3p.shape),
        ],
        out_specs=pl.BlockSpec((bt, out_cols), lambda i: (i, 0)),
        compiler_params=pltpu.CompilerParams(
            dimension_semantics=("parallel",)),                   # v7x: 2 TCs
    )(x_bf, w1_bf, b1, w2_bf, b2, w3_bf, b3p)

    return out_padded[:B, :num_outputs]


def init_params(key, num_inputs, hidden_size, num_outputs):
    """Deterministic synthetic init (PyTorch-Linear-like uniform bounds)."""
    ks = jax.random.split(key, 6)

    def linear(kw, kb, fan_in, fan_out):
        bound = 1.0 / jnp.sqrt(fan_in)
        w = jax.random.uniform(kw, (fan_in, fan_out), jnp.float32, -bound, bound)
        b = jax.random.uniform(kb, (1, fan_out), jnp.float32, -bound, bound)
        return w, b

    w1, b1 = linear(ks[0], ks[1], num_inputs, hidden_size)
    w2, b2 = linear(ks[2], ks[3], hidden_size, hidden_size)
    w3, b3 = linear(ks[4], ks[5], hidden_size, num_outputs)
    return (w1, b1, w2, b2, w3, b3)


if __name__ == "__main__":
    B = 2048          # rollout-sized batch (amortizes launch/DMA overhead)
    num_inputs = 16   # observation dim
    hidden_size = 32  # args.hidden_size
    num_outputs = 8   # action dim

    key = jax.random.PRNGKey(0)
    kx, kp = jax.random.split(key)
    x = jax.random.normal(kx, (B, num_inputs), jnp.float32)
    params = init_params(kp, num_inputs, hidden_size, num_outputs)

    mu = jax.jit(actor_forward)(x, params)
    jax.block_until_ready(mu)

    # reference check in plain JAX (fp32)
    w1, b1, w2, b2, w3, b3 = params
    h = jnp.tanh(x @ w1 + b1)
    h = jnp.tanh(h @ w2 + b2)
    ref = jax.nn.softmax(h @ w3 + b3, axis=-1)

    assert mu.shape == (B, num_outputs)
    # bf16 matmul operands + approx reciprocal -> slightly looser tolerance
    assert jnp.allclose(mu, ref, atol=1e-2, rtol=1e-2), float(jnp.max(jnp.abs(mu - ref)))
    assert jnp.allclose(jnp.sum(mu, axis=-1), 1.0, atol=2e-3)

    print("KERNEL_OK")
</pallas_src>

<mosaic_0001>
module attributes {stable_mosaic.version = 11 : i64} {
  func.func @actor_kernel(%arg0: i32, %arg1: memref<512x16xbf16, #tpu.memory_space<vmem>>, %arg2: memref<16x32xbf16, #tpu.memory_space<vmem>>, %arg3: memref<1x32xf32, #tpu.memory_space<vmem>>, %arg4: memref<32x32xbf16, #tpu.memory_space<vmem>>, %arg5: memref<1x32xf32, #tpu.memory_space<vmem>>, %arg6: memref<32x128xbf16, #tpu.memory_space<vmem>>, %arg7: memref<1x128xf32, #tpu.memory_space<vmem>>, %arg8: memref<512x128xf32, #tpu.memory_space<vmem>>) attributes {dimension_semantics = [#tpu.dimension_semantics<parallel>], iteration_bounds = array<i64: 4>, scalar_prefetch = 0 : i64, scratch_operands = 0 : i64, tpu.core_type = #tpu.core_type<tc>, window_params = [{transform_indices = @transform_0, window_bounds = array<i64: 512, 16>}, {pipeline_mode = #tpu.pipeline_mode<synchronous>, transform_indices = @transform_1, window_bounds = array<i64: 16, 32>}, {pipeline_mode = #tpu.pipeline_mode<synchronous>, transform_indices = @transform_2, window_bounds = array<i64: 1, 32>}, {pipeline_mode = #tpu.pipeline_mode<synchronous>, transform_indices = @transform_3, window_bounds = array<i64: 32, 32>}, {pipeline_mode = #tpu.pipeline_mode<synchronous>, transform_indices = @transform_4, window_bounds = array<i64: 1, 32>}, {pipeline_mode = #tpu.pipeline_mode<synchronous>, transform_indices = @transform_5, window_bounds = array<i64: 32, 128>}, {pipeline_mode = #tpu.pipeline_mode<synchronous>, transform_indices = @transform_6, window_bounds = array<i64: 1, 128>}, {transform_indices = @transform_7, window_bounds = array<i64: 512, 128>}]} {
    %c0 = arith.constant 0 : index
    %c0_0 = arith.constant 0 : index
    %0 = vector.load %arg1[%c0, %c0_0] : memref<512x16xbf16, #tpu.memory_space<vmem>>, vector<512x16xbf16>
    %c0_1 = arith.constant 0 : index
    %c0_2 = arith.constant 0 : index
    %1 = vector.load %arg2[%c0_1, %c0_2] : memref<16x32xbf16, #tpu.memory_space<vmem>>, vector<16x32xbf16>
    %cst = arith.constant dense<0.000000e+00> : vector<512x32xf32>
    %2 = tpu.matmul %0, %1, %cst {dimension_numbers = #tpu.dot_dimension_numbers<[1], [0], [0], [1], [0, 0, 1, 1], [], []>} : vector<512x16xbf16>, vector<16x32xbf16>, vector<512x32xf32> -> vector<512x32xf32>
    %c0_3 = arith.constant 0 : index
    %c0_4 = arith.constant 0 : index
    %3 = vector.load %arg3[%c0_3, %c0_4] : memref<1x32xf32, #tpu.memory_space<vmem>>, vector<1x32xf32>
    %4 = vector.broadcast %3 : vector<1x32xf32> to vector<512x32xf32>
    %5 = arith.addf %2, %4 : vector<512x32xf32>
    %6 = math.tanh %5 : vector<512x32xf32>
    %7 = arith.truncf %6 : vector<512x32xf32> to vector<512x32xbf16>
    %c0_5 = arith.constant 0 : index
    %c0_6 = arith.constant 0 : index
    %8 = vector.load %arg4[%c0_5, %c0_6] : memref<32x32xbf16, #tpu.memory_space<vmem>>, vector<32x32xbf16>
    %cst_7 = arith.constant dense<0.000000e+00> : vector<512x32xf32>
    %9 = tpu.matmul %7, %8, %cst_7 {dimension_numbers = #tpu.dot_dimension_numbers<[1], [0], [0], [1], [0, 0, 1, 1], [], []>} : vector<512x32xbf16>, vector<32x32xbf16>, vector<512x32xf32> -> vector<512x32xf32>
    %c0_8 = arith.constant 0 : index
    %c0_9 = arith.constant 0 : index
    %10 = vector.load %arg5[%c0_8, %c0_9] : memref<1x32xf32, #tpu.memory_space<vmem>>, vector<1x32xf32>
    %11 = vector.broadcast %10 : vector<1x32xf32> to vector<512x32xf32>
    %12 = arith.addf %9, %11 : vector<512x32xf32>
    %13 = math.tanh %12 : vector<512x32xf32>
    %14 = arith.truncf %13 : vector<512x32xf32> to vector<512x32xbf16>
    %c0_10 = arith.constant 0 : index
    %c0_11 = arith.constant 0 : index
    %15 = vector.load %arg6[%c0_10, %c0_11] : memref<32x128xbf16, #tpu.memory_space<vmem>>, vector<32x128xbf16>
    %cst_12 = arith.constant dense<0.000000e+00> : vector<512x128xf32>
    %16 = tpu.matmul %14, %15, %cst_12 {dimension_numbers = #tpu.dot_dimension_numbers<[1], [0], [0], [1], [0, 0, 1, 1], [], []>} : vector<512x32xbf16>, vector<32x128xbf16>, vector<512x128xf32> -> vector<512x128xf32>
    %c0_13 = arith.constant 0 : index
    %c0_14 = arith.constant 0 : index
    %17 = vector.load %arg7[%c0_13, %c0_14] : memref<1x128xf32, #tpu.memory_space<vmem>>, vector<1x128xf32>
    %18 = vector.broadcast %17 : vector<1x128xf32> to vector<512x128xf32>
    %19 = arith.addf %16, %18 : vector<512x128xf32>
    %cst_15 = arith.constant dense<0xFF800000> : vector<512xf32>
    %20 = vector.multi_reduction <maximumf>, %19, %cst_15 [1] : vector<512x128xf32> to vector<512xf32>
    %21 = vector.shape_cast %20 : vector<512xf32> to vector<512x1xf32>
    %22 = vector.broadcast %21 : vector<512x1xf32> to vector<512x128xf32>
    %23 = arith.subf %19, %22 : vector<512x128xf32>
    %24 = math.exp %23 : vector<512x128xf32>
    %cst_16 = arith.constant dense<0.000000e+00> : vector<512xf32>
    %25 = vector.multi_reduction <add>, %24, %cst_16 [1] : vector<512x128xf32> to vector<512xf32>
    %26 = vector.shape_cast %25 : vector<512xf32> to vector<512x1xf32>
    %27 = tpu.reciprocal %26 {approx = true} : vector<512x1xf32> -> vector<512x1xf32>
    %28 = vector.broadcast %27 : vector<512x1xf32> to vector<512x128xf32>
    %29 = arith.mulf %24, %28 : vector<512x128xf32>
    %c0_17 = arith.constant 0 : index
    %c0_18 = arith.constant 0 : index
    %30 = vector.load %arg8[%c0_17, %c0_18] : memref<512x128xf32, #tpu.memory_space<vmem>>, vector<512x128xf32>
    tpu.vector_store %arg8[%c0_17, %c0_18], %29 {strides = array<i32>} : memref<512x128xf32, #tpu.memory_space<vmem>>, vector<512x128xf32>,
    return
  }
  func.func @transform_0(%arg0: i32) -> (i32, i32) {
    %c0_i32 = arith.constant 0 : i32
    %c0_i32_0 = arith.constant 0 : i32
    return %arg0, %c0_i32 : i32, i32
  }
  func.func @transform_1(%arg0: i32) -> (i32, i32) {
    %c0_i32 = arith.constant 0 : i32
    %c0_i32_0 = arith.constant 0 : i32
    %c0_i32_1 = arith.constant 0 : i32
    return %c0_i32, %c0_i32_0 : i32, i32
  }
  func.func @transform_2(%arg0: i32) -> (i32, i32) {
    %c0_i32 = arith.constant 0 : i32
    %c0_i32_0 = arith.constant 0 : i32
    %c0_i32_1 = arith.constant 0 : i32
    return %c0_i32, %c0_i32_0 : i32, i32
  }
  func.func @transform_3(%arg0: i32) -> (i32, i32) {
    %c0_i32 = arith.constant 0 : i32
    %c0_i32_0 = arith.constant 0 : i32
    %c0_i32_1 = arith.constant 0 : i32
    return %c0_i32, %c0_i32_0 : i32, i32
  }
  func.func @transform_4(%arg0: i32) -> (i32, i32) {
    %c0_i32 = arith.constant 0 : i32
    %c0_i32_0 = arith.constant 0 : i32
    %c0_i32_1 = arith.constant 0 : i32
    return %c0_i32, %c0_i32_0 : i32, i32
  }
  func.func @transform_5(%arg0: i32) -> (i32, i32) {
    %c0_i32 = arith.constant 0 : i32
    %c0_i32_0 = arith.constant 0 : i32
    %c0_i32_1 = arith.constant 0 : i32
    return %c0_i32, %c0_i32_0 : i32, i32
  }
  func.func @transform_6(%arg0: i32) -> (i32, i32) {
    %c0_i32 = arith.constant 0 : i32
    %c0_i32_0 = arith.constant 0 : i32
    %c0_i32_1 = arith.constant 0 : i32
    return %c0_i32, %c0_i32_0 : i32, i32
  }
  func.func @transform_7(%arg0: i32) -> (i32, i32) {
    %c0_i32 = arith.constant 0 : i32
    %c0_i32_0 = arith.constant 0 : i32
    return %arg0, %c0_i32 : i32, i32
  }
}

</mosaic_0001>

<bundles_post_ra>
// kernel: actor_forward.1
= control target key start
LH: loop header
LB: loop body
LE: loop exit
PB: predicated region body
PF: predicated region fallthrough
CT: control target
= control target key end

     0   :  { %s3670_s24 = smov 0   ;;  %s4690_s0 = inlined_call_operand.vmem [shape: bf16[2048,16], index: 0, kind: input, shape index: {}]   ;;  %s4691_s1 = inlined_call_operand.vmem [shape: bf16[16,32], index: 1, kind: input, shape index: {}]   ;;  %s4692_s2 = inlined_call_operand.vmem [shape: f32[1,32], index: 2, kind: input, shape index: {}]   ;;  %s4693_s3 = inlined_call_operand.vmem [shape: bf16[32,32], index: 3, kind: input, shape index: {}]   ;;  %s4694_s4 = inlined_call_operand.vmem [shape: f32[1,32], index: 4, kind: input, shape index: {}]   ;;  %s4695_s5 = inlined_call_operand.vmem [shape: bf16[32,128], index: 5, kind: input, shape index: {}]   ;;  %s4696_s6 = inlined_call_operand.vmem [shape: f32[1,128], index: 6, kind: input, shape index: {}]   ;;  %s4697_s7 = inlined_call_operand.vmem [shape: f32[2048,128], index: 7, kind: output, shape index: {}]  }
   0x1 LB: > { %s2613_s25 = sadd.s32 4294967295, %s3628_s24   ;;  %p2617_p0 = scmp.ge.s32.totalorder %s3628_s24, 1  ;;  %s3628_s24 = sphi %s3670_s24, %s17_s24  }
   0x2   : > { %p238_p1 = scmp.lt.s32.totalorder %s3628_s24, 5 }
   0x4   : > { %p239_p2 = pnand %p2617_p0, %p238_p1 }
   0x6   : > { %242 = sbr.rel (%p239_p2) target bundleno = 1093 (0x445), region = 48 }
   0xb   : > { %v3073_v0 = vld [vmem:[%s4691_s1] sm:$0xff]   ;;  %s2618_s28 = sshll.u32 %s2613_s25, 6  ;;  %v3106_v1 = vld [vmem:[%s4693_s3 + $0x8] sm:$0xff]   ;;  %vm522_vm0 = vcmask 130048   ;;  %vm1027_vm1 = vcmask 261120  }
   0xc   : > { %p271_p3 = scmp.lt.s32.totalorder %s2618_s28, 255  ;;  %2861 = vmatprep.subr.bf16.mxu0 %v3073_v0  ;;  %3063 = vmatprep.subr.bf16.mxu1 %v3073_v0  ;;  %v3107_v10 = vld [vmem:[%s4693_s3] sm:$0xff]   ;;  %v3108_v56 = vld [vmem:[%s4695_s5 + $0x8] sm:$0xff]  }
   0xd   : > { %2862 = vmatpush3.bf16.msra.mxu0 %v3073_v0  ;;  %3064 = vmatpush3.bf16.msra.mxu1 %v3073_v0  ;;  %v3762_v36 = vld [vmem:[%s4692_s2] ss:$0 sm:$0xff] }
   0xe   : > { %s4774_s28 = smov (!%p271_p3, %s2618_s28), 255  ;;  %2927 = vmatprep.subr.bf16.mxu1 %v3106_v1  ;;  %v3109_v57 = vld [vmem:[%s4695_s5] sm:$0xff]   ;;  %2995 = vmatprep.subr.bf16.mxu0 %v3108_v56 }
   0xf   : > { %s2619_s8 = sshll.u32 %s4774_s28, 2  ;;  %s2621_s25 = sshll.u32 %s4774_s28, 3 }
  0x10   : > { %s3690_s11 = scalar_lea.vmem %s4690_s0, %s2619_s8  ;;  %s4557_s29 = scalar_lea.vmem %s4697_s7, %s2621_s25 }
  0x11   : > { %v3074_v2 = vld [vmem:[%s3690_s11] sm:$0xff]   ;;  %v3075_v3 = vld [vmem:[%s3690_s11 + $0x8] sm:$0xff]   ;;  %v3076_v4 = vld [vmem:[%s3690_s11 + $0x10] sm:$0xff]  }
  0x12   : > { %2863 = vmatprep.mubr.msk.bf16.mxu0 %vm522_vm0, %v3074_v2  ;;  %v3077_v5 = vld [vmem:[%s3690_s11 + $0x18] sm:$0xff]   ;;  %v3078_v6 = vld [vmem:[%s3690_s11 + $0x20] sm:$0xff]   ;;  %v3079_v7 = vld [vmem:[%s3690_s11 + $0x28] sm:$0xff]  }
  0x13   : > { %2864 = vmatmul.mubr.msk.bf16.vlgmr.msra.gmra.mxu0 %vm522_vm0, %v3075_v3  ;;  %v3080_v8 = vld [vmem:[%s3690_s11 + $0x30] sm:$0xff]   ;;  %v3090_v9 = vld [vmem:[%s3690_s11 + $0x80] sm:$0xff]   ;;  %v3091_v11 = vld [vmem:[%s3690_s11 + $0x88] sm:$0xff]  }
  0x14   : > { %2867 = vmatprep.mubr.msk.bf16.mxu0 %vm522_vm0, %v3076_v4  ;;  %2895 = vmatprep.mubr.msk.bf16.mxu1 %vm522_vm0, %v3090_v9  ;;  %v3092_v12 = vld [vmem:[%s3690_s11 + $0x90] sm:$0xff]   ;;  %v3081_v13 = vld [vmem:[%s3690_s11 + $0x38] sm:$0xff]   ;;  %v3082_v14 = vld [vmem:[%s3690_s11 + $0x40] sm:$0xff]  }
  0x15   : > { %2896 = vmatmul.mubr.msk.bf16.vlgmr.msra.gmra.mxu1 %vm522_vm0, %v3091_v11  ;;  %v3093_v15 = vld [vmem:[%s3690_s11 + $0x98] sm:$0xff]   ;;  %v3094_v16 = vld [vmem:[%s3690_s11 + $0xa0] sm:$0xff]   ;;  %v3083_v17 = vld [vmem:[%s3690_s11 + $0x48] sm:$0xff]   ;;  %2996 = vmatpush3.bf16.msra.mxu0 %v3108_v56 }
  0x16   : > { %2899 = vmatprep.mubr.msk.bf16.mxu1 %vm522_vm0, %v3092_v12  ;;  %2928 = vmatpush3.bf16.msra.mxu1 %v3106_v1  ;;  %v3095_v18 = vld [vmem:[%s3690_s11 + $0xa8] sm:$0xff]   ;;  %v3084_v19 = vld [vmem:[%s3690_s11 + $0x50] sm:$0xff]   ;;  %v3085_v21 = vld [vmem:[%s3690_s11 + $0x58] sm:$0xff]  }
  0x17   : > { %2929 = vmatprep.subr.bf16.mxu1 %v3107_v10  ;;  %v3096_v20 = vld [vmem:[%s3690_s11 + $0xb0] sm:$0xff]   ;;  %v3097_v22 = vld [vmem:[%s3690_s11 + $0xb8] sm:$0xff]   ;;  %v3086_v23 = vld [vmem:[%s3690_s11 + $0x60] sm:$0xff]   ;;  %2997 = vmatprep.subr.bf16.mxu0 %v3109_v57 }
  0x18   : > { %v3098_v24 = vld [vmem:[%s3690_s11 + $0xc0] sm:$0xff]   ;;  %v3087_v25 = vld [vmem:[%s3690_s11 + $0x68] sm:$0xff]   ;;  %v3088_v27 = vld [vmem:[%s3690_s11 + $0x70] sm:$0xff]  }
  0x19   : > { %v3099_v26 = vld [vmem:[%s3690_s11 + $0xc8] sm:$0xff]   ;;  %v3100_v28 = vld [vmem:[%s3690_s11 + $0xd0] sm:$0xff]   ;;  %v3089_v29 = vld [vmem:[%s3690_s11 + $0x78] sm:$0xff]   ;;  %2998 = vmatpush3.bf16.msra.mxu0 %v3109_v57 }
  0x1a   : > { %2930 = vmatpush3.bf16.msra.mxu1 %v3107_v10  ;;  %v3101_v30 = vld [vmem:[%s3690_s11 + $0xd8] sm:$0xff]   ;;  %v3102_v31 = vld [vmem:[%s3690_s11 + $0xe0] sm:$0xff]   ;;  %v3103_v32 = vld [vmem:[%s3690_s11 + $0xe8] sm:$0xff]  }
  0x1b   : > { %2868 = vmatmul.mubr.msk.bf16.gmra.mxu0 %vm522_vm0, %v3077_v5  ;;  %v3104_v33 = vld [vmem:[%s3690_s11 + $0xf0] sm:$0xff]   ;;  %v3105_v34 = vld [vmem:[%s3690_s11 + $0xf8] sm:$0xff]  }
  0x1c   : > { %2871 = vmatprep.mubr.msk.bf16.mxu0 %vm522_vm0, %v3078_v6 }
  0x1d   : > { %2900 = vmatmul.mubr.msk.bf16.gmra.mxu1 %vm522_vm0, %v3093_v15 }
  0x1e   : > { %2903 = vmatprep.mubr.msk.bf16.mxu1 %vm522_vm0, %v3094_v16 }
  0x23   : > { %2872 = vmatmul.mubr.msk.bf16.gmra.mxu0 %vm522_vm0, %v3079_v7 }
  0x24   : > { %2875 = vmatprep.mubr.msk.bf16.mxu0 %vm522_vm0, %v3080_v8 }
  0x25   : > { %2904 = vmatmul.mubr.msk.bf16.gmra.mxu1 %vm522_vm0, %v3095_v18 }
  0x26   : > { %2907 = vmatprep.mubr.msk.bf16.mxu1 %vm522_vm0, %v3096_v20 }
  0x2b   : > { %2876 = vmatmul.mubr.msk.bf16.gmra.mxu0 %vm522_vm0, %v3081_v13 }
  0x2c   : > { %2879 = vmatprep.mubr.msk.bf16.mxu0 %vm522_vm0, %v3082_v14 }
  0x2d   : > { %2908 = vmatmul.mubr.msk.bf16.gmra.mxu1 %vm522_vm0, %v3097_v22 }
  0x2e   : > { %2911 = vmatprep.mubr.msk.bf16.mxu1 %vm522_vm0, %v3098_v24 }
  0x33   : > { %2880 = vmatmul.mubr.msk.bf16.gmra.mxu0 %vm522_vm0, %v3083_v17 }
  0x34   : > { %2883 = vmatprep.mubr.msk.bf16.mxu0 %vm522_vm0, %v3084_v19 }
  0x35   : > { %2912 = vmatmul.mubr.msk.bf16.gmra.mxu1 %vm522_vm0, %v3099_v26 }
  0x36   : > { %2915 = vmatprep.mubr.msk.bf16.mxu1 %vm522_vm0, %v3100_v28 }
  0x3b   : > { %2884 = vmatmul.mubr.msk.bf16.gmra.mxu0 %vm522_vm0, %v3085_v21 }
  0x3c   : > { %2887 = vmatprep.mubr.msk.bf16.mxu0 %vm522_vm0, %v3086_v23 }
  0x3d   : > { %2916 = vmatmul.mubr.msk.bf16.gmra.mxu1 %vm522_vm0, %v3101_v30 }
  0x3e   : > { %2919 = vmatprep.mubr.msk.bf16.mxu1 %vm522_vm0, %v3102_v31 }
  0x43   : > { %2888 = vmatmul.mubr.msk.bf16.gmra.mxu0 %vm522_vm0, %v3087_v25 }
  0x44   : > { %2891 = vmatprep.mubr.msk.bf16.mxu0 %vm522_vm0, %v3088_v27 }
  0x45   : > { %2920 = vmatmul.mubr.msk.bf16.gmra.mxu1 %vm522_vm0, %v3103_v32 }
  0x46   : > { %2923 = vmatprep.mubr.msk.bf16.mxu1 %vm522_vm0, %v3104_v33 }
  0x4b   : > { %2892 = vmatmul.mubr.msk.bf16.gmra.mxu0 %vm522_vm0, %v3089_v29 }
  0x4d   : > { %2924 = vmatmul.mubr.msk.bf16.gmra.mxu1 %vm522_vm0, %v3105_v34 }
  0xd3   : > { %v2865_v35 = vpop.f32.mrf.mxu0 }
  0xd4   : > { %v662_v41 = vadd.f32 %v2865_v35, %v3762_v36 }
  0xd5   : > { %v653_v37 = vpop.f32.mrf.mxu0  ;;  %v3772_v53 = vpop.f32.mrf.mxu1 }
  0xd6   : > { %v654_v38 = vadd.f32 %v3762_v36, %v653_v37 }
  0xd7   : > { %v2866_v39 = vpop.f32.mrf.mxu0  ;;  %v3774_v55 = vpop.f32.mrf.mxu1 }
  0xd8   : > { %v665_v40 = vadd.f32 %v2866_v39, %v3762_v36  ;;  %3110 = vtanh.f32 %v654_v38 }
  0xd9   : > { %v656_v42 = vpop.f32.mrf.mxu0  ;;  %v3783_v61 = vpop.f32.mrf.mxu1 }
  0xda   : > { %v657_v43 = vadd.f32 %v3762_v36, %v656_v42  ;;  %3112 = vtanh.f32 %v665_v40 }
  0xdb   : > { %v2869_v44 = vpop.f32.mrf.mxu0  ;;  %v3787_v3 = vpop.f32.mrf.mxu1 }
  0xdc   : > { %3114 = vtanh.f32 %v657_v43  ;;  %v678_v49 = vadd.f32 %v2869_v44, %v3762_v36 }
  0xdd   : > { %3116 = vtanh.f32 %v662_v41  ;;  %v669_v45 = vpop.f32.mrf.mxu0  ;;  %v3790_v9 = vpop.f32.mrf.mxu1 }
  0xde   : > { %v670_v46 = vadd.f32 %v3762_v36, %v669_v45 }
  0xdf   : > { %v2870_v47 = vpop.f32.mrf.mxu0  ;;  %v3794_v11 = vpop.f32.mrf.mxu1 }
  0xe0   : > { %v681_v48 = vadd.f32 %v2870_v47, %v3762_v36  ;;  %3118 = vtanh.f32 %v670_v46 }
  0xe1   : > { %v672_v50 = vpop.f32.mrf.mxu0  ;;  %v3797_v15 = vpop.f32.mrf.mxu1 }
  0xe2   : > { %v673_v51 = vadd.f32 %v3762_v36, %v672_v50  ;;  %3120 = vtanh.f32 %v681_v48 }
  0xe3   : > { %v2873_v52 = vpop.f32.mrf.mxu0  ;;  %v3801_v21 = vpop.f32.mrf.mxu1 }
  0xe4   : > { %3122 = vtanh.f32 %v673_v51  ;;  %v694_v1 = vadd.f32 %v2873_v52, %v3762_v36 }
  0xe5   : > { %3124 = vtanh.f32 %v678_v49  ;;  %v685_v54 = vpop.f32.mrf.mxu0  ;;  %v3111_v59 = vpop.eup %3110 }
  0xe6   : > { %v686_v58 = vadd.f32 %v3762_v36, %v685_v54  ;;  %v3804_v27 = vpop.f32.mrf.mxu1 }
  0xe7   : > { %v2874_v60 = vpop.f32.mrf.mxu0  ;;  %v3113_v62 = vpop.eup %3112 }
  0xe8   : > { %v697_v63 = vadd.f32 %v2874_v60, %v3762_v36  ;;  %3126 = vtanh.f32 %v686_v58  ;;  %v3808_v29 = vpop.f32.mrf.mxu1 }
  0xe9   : > { %v3115_v0 = vpop.eup %3114  ;;  %v688_v2 = vpop.f32.mrf.mxu0 }
  0xea   : > { %v3117_v4 = vpop.eup %3116  ;;  %v689_v5 = vadd.f32 %v3762_v36, %v688_v2  ;;  %v972_v6 = vpack.c.bf16 %v3115_v0, %v3111_v59  ;;  %3128 = vtanh.f32 %v697_v63  ;;  %v3811_v33 = vpop.f32.mrf.mxu1 }
  0xeb   : > { %v973_v7 = vpack.c.bf16 %v3113_v62, %v3117_v4  ;;  %v2877_v8 = vpop.f32.mrf.mxu0 }
  0xec   : > { %3130 = vtanh.f32 %v689_v5  ;;  %2931 = vmatprep.mubr.msk.bf16.mxu1 %vm1027_vm1, %v972_v6  ;;  %v710_v19 = vadd.f32 %v2877_v8, %v3762_v36  ;;  %v3815_v40 = vpop.f32.mrf.mxu1 }
  0xed   : > { %3132 = vtanh.f32 %v694_v1  ;;  %v701_v10 = vpop.f32.mrf.mxu0  ;;  %2932 = vmatmul.mubr.msk.bf16.vlgmr.msra.gmra.mxu1 %vm1027_vm1, %v973_v7  ;;  %v3119_v13 = vpop.eup %3118 }
  0xee   : > { %v702_v12 = vadd.f32 %v3762_v36, %v701_v10  ;;  %v3818_v46 = vpop.f32.mrf.mxu1 }
  0xef   : > { %v2878_v14 = vpop.f32.mrf.mxu0  ;;  %v3121_v16 = vpop.eup %3120 }
  0xf0   : > { %v713_v17 = vadd.f32 %v2878_v14, %v3762_v36  ;;  %3134 = vtanh.f32 %v702_v12  ;;  %v3822_v48 = vpop.f32.mrf.mxu1 }
  0xf1   : > { %v3123_v18 = vpop.eup %3122  ;;  %v704_v20 = vpop.f32.mrf.mxu0 }
  0xf2   : > { %v3125_v22 = vpop.eup %3124  ;;  %v705_v23 = vadd.f32 %v3762_v36, %v704_v20  ;;  %v974_v24 = vpack.c.bf16 %v3123_v18, %v3119_v13  ;;  %3136 = vtanh.f32 %v713_v17  ;;  %v3825_v52 = vpop.f32.mrf.mxu1 }
  0xf3   : > { %v2881_v25 = vpop.f32.mrf.mxu0  ;;  %v975_v26 = vpack.c.bf16 %v3121_v16, %v3125_v22 }
  0xf4   : > { %3138 = vtanh.f32 %v705_v23  ;;  %2935 = vmatprep.mubr.msk.bf16.mxu1 %vm1027_vm1, %v974_v24  ;;  %v726_v38 = vadd.f32 %v2881_v25, %v3762_v36  ;;  %v3830_v2 = vpop.f32.mrf.mxu1  ;;  %v782_v24 = vadd.f32 %v3762_v36, %v3774_v55 }
  0xf5   : > { %3140 = vtanh.f32 %v710_v19  ;;  %v717_v28 = vpop.f32.mrf.mxu0  ;;  %2936 = vmatmul.mubr.msk.bf16.gmra.mxu1 %vm1027_vm1, %v975_v26  ;;  %v3127_v31 = vpop.eup %3126  ;;  %v785_v26 = vadd.f32 %v3762_v36, %v3787_v3 }
  0xf6   : > { %v718_v30 = vadd.f32 %v3762_v36, %v717_v28  ;;  %v3835_v8 = vpop.f32.mrf.mxu1 }
  0xf7   : > { %v2882_v32 = vpop.f32.mrf.mxu0  ;;  %v3129_v34 = vpop.eup %3128 }
  0xf8   : > { %v729_v35 = vadd.f32 %v2882_v32, %v3762_v36  ;;  %3142 = vtanh.f32 %v718_v30  ;;  %v3840_v23 = vpop.f32.mrf.mxu1 }
  0xf9   : > { %v3131_v37 = vpop.eup %3130  ;;  %v720_v39 = vpop.f32.mrf.mxu0 }
  0xfa   : > { %v3133_v41 = vpop.eup %3132  ;;  %v721_v42 = vadd.f32 %v3762_v36, %v720_v39  ;;  %v976_v43 = vpack.c.bf16 %v3131_v37, %v3127_v31  ;;  %3144 = vtanh.f32 %v729_v35  ;;  %v3849_v32 = vpop.f32.mrf.mxu1 }
  0xfb   : > { %v2885_v44 = vpop.f32.mrf.mxu0  ;;  %v977_v45 = vpack.c.bf16 %v3129_v34, %v3133_v41 }
  0xfc   : > { %3146 = vtanh.f32 %v721_v42  ;;  %2939 = vmatprep.mubr.msk.bf16.mxu1 %vm1027_vm1, %v976_v43  ;;  %v742_v58 = vadd.f32 %v2885_v44, %v3762_v36  ;;  %v3854_v43 = vpop.f32.mrf.mxu1  ;;  %v790_v44 = vadd.f32 %v3772_v53, %v3762_v36 }
  0xfd   : > { %3148 = vtanh.f32 %v726_v38  ;;  %v733_v47 = vpop.f32.mrf.mxu0  ;;  %2940 = vmatmul.mubr.msk.bf16.gmra.mxu1 %vm1027_vm1, %v977_v45  ;;  %v3135_v50 = vpop.eup %3134  ;;  %v798_v45 = vadd.f32 %v3762_v36, %v3794_v11  ;;  %v806_v11 = vadd.f32 %v3790_v9, %v3762_v36 }
  0xfe   : > { %v734_v49 = vadd.f32 %v3762_v36, %v733_v47  ;;  %v801_v47 = vadd.f32 %v3762_v36, %v3801_v21 }
  0xff   : > { %v2886_v51 = vpop.f32.mrf.mxu0  ;;  %v3137_v54 = vpop.eup %3136 }
 0x100   : > { %v745_v56 = vadd.f32 %v2886_v51, %v3762_v36  ;;  %3150 = vtanh.f32 %v734_v49  ;;  %v3866_v51 = vpop.f32.mrf.mxu1 }
 0x101   : > { %v3139_v57 = vpop.eup %3138  ;;  %v736_v59 = vpop.f32.mrf.mxu0 }
 0x102   : > { %v3141_v60 = vpop.eup %3140  ;;  %v737_v62 = vadd.f32 %v3762_v36, %v736_v59  ;;  %v978_v63 = vpack.c.bf16 %v3139_v57, %v3135_v50  ;;  %3152 = vtanh.f32 %v745_v56  ;;  %v793_v50 = vadd.f32 %v3783_v61, %v3762_v36  ;;  %v861_v59 = vpop.f32.mrf.mxu1 }
 0x103   : > { %v2889_v0 = vpop.f32.mrf.mxu0  ;;  %v979_v1 = vpack.c.bf16 %v3137_v54, %v3141_v60  ;;  %v814_v61 = vadd.f32 %v3762_v36, %v3808_v29 }
 0x104   : > { %3154 = vtanh.f32 %v737_v62  ;;  %2943 = vmatprep.mubr.msk.bf16.mxu1 %vm1027_vm1, %v978_v63  ;;  %v758_v14 = vadd.f32 %v2889_v0, %v3762_v36  ;;  %v817_v62 = vadd.f32 %v3762_v36, %v3815_v40  ;;  %v809_v0 = vadd.f32 %v3797_v15, %v3762_v36 }
 0x105   : > { %3156 = vtanh.f32 %v742_v58  ;;  %v749_v4 = vpop.f32.mrf.mxu0  ;;  %2944 = vmatmul.mubr.msk.bf16.gmra.mxu1 %vm1027_vm1, %v979_v1  ;;  %v3143_v6 = vpop.eup %3142  ;;  %v822_v40 = vadd.f32 %v3804_v27, %v3762_v36  ;;  %v830_v15 = vadd.f32 %v3762_v36, %v3822_v48 }
 0x106   : > { %v750_v5 = vadd.f32 %v3762_v36, %v749_v4  ;;  %v3878_v1 = vpop.f32.mrf.mxu1 }
 0x107   : > { %v2890_v7 = vpop.f32.mrf.mxu0  ;;  %v3145_v10 = vpop.eup %3144 }
 0x108   : > { %v761_v12 = vadd.f32 %v2890_v7, %v3762_v36  ;;  %3158 = vtanh.f32 %v750_v5 }
 0x109   : > { %v3147_v13 = vpop.eup %3146  ;;  %v752_v16 = vpop.f32.mrf.mxu0 }
 0x10a   : > { %v3149_v17 = vpop.eup %3148  ;;  %v753_v18 = vadd.f32 %v3762_v36, %v752_v16  ;;  %v980_v19 = vpack.c.bf16 %v3147_v13, %v3143_v6  ;;  %3160 = vtanh.f32 %v761_v12 }
 0x10b   : > { %v2893_v20 = vpop.f32.mrf.mxu0  ;;  %v981_v22 = vpack.c.bf16 %v3145_v10, %v3149_v17  ;;  %v864_v10 = vpop.f32.mrf.mxu1  ;;  %v825_v17 = vadd.f32 %v3811_v33, %v3762_v36 }
 0x10c   : > { %3162 = vtanh.f32 %v753_v18  ;;  %2947 = vmatprep.mubr.msk.bf16.mxu1 %vm1027_vm1, %v980_v19  ;;  %v774_v55 = vadd.f32 %v2893_v20, %v3762_v36 }
 0x10d   : > { %3164 = vtanh.f32 %v758_v14  ;;  %v765_v25 = vpop.f32.mrf.mxu0  ;;  %2948 = vmatmul.mubr.msk.bf16.gmra.mxu1 %vm1027_vm1, %v981_v22  ;;  %v3151_v30 = vpop.eup %3150  ;;  %v833_v14 = vadd.f32 %v3762_v36, %v3830_v2  ;;  %v838_v22 = vadd.f32 %v3818_v46, %v3762_v36  ;;  %v846_v2 = vadd.f32 %v3762_v36, %v3840_v23 }
 0x10e   : > { %v766_v28 = vadd.f32 %v3762_v36, %v765_v25  ;;  %3166 = vtanh.f32 %v782_v24  ;;  %v3891_v18 = vpop.f32.mrf.mxu1  ;;  %v849_v25 = vadd.f32 %v3762_v36, %v3854_v43  ;;  %v854_v23 = vadd.f32 %v3835_v8, %v3762_v36 }
 0x10f   : > { %v2894_v31 = vpop.f32.mrf.mxu0  ;;  %v3153_v34 = vpop.eup %3152  ;;  %3168 = vtanh.f32 %v785_v26 }
 0x110   : > { %v777_v35 = vadd.f32 %v2894_v31, %v3762_v36  ;;  %3170 = vtanh.f32 %v766_v28  ;;  %v877_v48 = vpop.f32.mrf.mxu1  ;;  %v841_v28 = vadd.f32 %v3825_v52, %v3762_v36  ;;  %v865_v52 = vadd.f32 %v3762_v36, %v864_v10 }
 0x111   : > { %v3155_v37 = vpop.eup %3154  ;;  %v768_v38 = vpop.f32.mrf.mxu0 }
 0x112   : > { %v3157_v39 = vpop.eup %3156  ;;  %v769_v41 = vadd.f32 %v3762_v36, %v768_v38  ;;  %v982_v3 = vpack.c.bf16 %v3155_v37, %v3151_v30  ;;  %3172 = vtanh.f32 %v777_v35  ;;  %v2922_v30 = vpop.f32.mrf.mxu1 }
 0x113   : > { %v983_v42 = vpack.c.bf16 %v3153_v34, %v3157_v39 }
 0x114   : > { %3174 = vtanh.f32 %v769_v41  ;;  %2951 = vmatprep.mubr.msk.bf16.mxu1 %vm1027_vm1, %v982_v3  ;;  %v880_v35 = vpop.f32.mrf.mxu1  ;;  %v857_v41 = vadd.f32 %v3849_v32, %v3762_v36 }
 0x115   : > { %3176 = vtanh.f32 %v774_v55  ;;  %2952 = vmatmul.mubr.msk.bf16.gmra.mxu1 %vm1027_vm1, %v983_v42  ;;  %v3159_v49 = vpop.eup %3158  ;;  %v862_v55 = vadd.f32 %v3762_v36, %v861_v59  ;;  %v881_v32 = vadd.f32 %v3762_v36, %v880_v35 }
 0x116   : > { %3178 = vtanh.f32 %v790_v44  ;;  %v2925_v3 = vpop.f32.mrf.mxu1 }
 0x117   : > { %v3161_v54 = vpop.eup %3160  ;;  %3180 = vtanh.f32 %v798_v45  ;;  %v870_v45 = vadd.f32 %v3866_v51, %v3762_v36 }
 0x118   : > { %3182 = vtanh.f32 %v801_v47  ;;  %v893_v44 = vpop.f32.mrf.mxu1 }
 0x119   : > { %v3163_v53 = vpop.eup %3162  ;;  %3184 = vtanh.f32 %v793_v50 }
 0x11a   : > { %v3165_v56 = vpop.eup %3164  ;;  %v984_v57 = vpack.c.bf16 %v3163_v53, %v3159_v49  ;;  %3186 = vtanh.f32 %v806_v11  ;;  %v878_v49 = vadd.f32 %v3762_v36, %v877_v48  ;;  %v873_v53 = vadd.f32 %v3878_v1, %v3762_v36 }
 0x11b   : > { %v985_v58 = vpack.c.bf16 %v3161_v54, %v3165_v56  ;;  %v3167_v21 = vpop.eup %3166  ;;  %3188 = vtanh.f32 %v814_v61  ;;  %v2926_v56 = vpop.f32.mrf.mxu1  ;;  %v886_v11 = vadd.f32 %v3891_v18, %v3762_v36  ;;  %v894_v61 = vadd.f32 %v3762_v36, %v893_v44 }
 0x11c   : > { %2955 = vmatprep.mubr.msk.bf16.mxu1 %vm1027_vm1, %v984_v57  ;;  %v3169_v60 = vpop.eup %3168  ;;  %3190 = vtanh.f32 %v817_v62  ;;  %v905_v10 = vadd.f32 %v2926_v56, %v3762_v36 }
 0x11d   : > { %2956 = vmatmul.mubr.msk.bf16.gmra.mxu1 %vm1027_vm1, %v985_v58  ;;  %v3171_v63 = vpop.eup %3170  ;;  %v988_v7 = vpack.c.bf16 %v3169_v60, %v3167_v21  ;;  %3192 = vtanh.f32 %v809_v0  ;;  %v896_v59 = vpop.f32.mrf.mxu1  ;;  %v889_v0 = vadd.f32 %v2922_v30, %v3762_v36 }
 0x11e   : > { %3194 = vtanh.f32 %v822_v40  ;;  %v897_v62 = vadd.f32 %v3762_v36, %v896_v59 }
 0x11f   : > { %v3173_v4 = vpop.eup %3172  ;;  %3196 = vtanh.f32 %v830_v15 }
 0x120   : > { %3198 = vtanh.f32 %v833_v14 }
 0x121   : > { %v3175_v9 = vpop.eup %3174  ;;  %3200 = vtanh.f32 %v825_v17 }
 0x122   : > { %v3177_v5 = vpop.eup %3176  ;;  %v986_v6 = vpack.c.bf16 %v3175_v9, %v3171_v63  ;;  %3202 = vtanh.f32 %v838_v22  ;;  %v3938_v22 = vld [vmem:[%s4694_s4] ss:$0 sm:$0xff] }
 0x123   : > { %v987_v29 = vpack.c.bf16 %v3173_v4, %v3177_v5  ;;  %v3179_v12 = vpop.eup %3178  ;;  %3204 = vtanh.f32 %v846_v2 }
 0x124   : > { %2959 = vmatprep.mubr.msk.bf16.mxu1 %vm1027_vm1, %v986_v6  ;;  %v3181_v13 = vpop.eup %3180  ;;  %3206 = vtanh.f32 %v849_v25 }
 0x125   : > { %2960 = vmatmul.mubr.msk.bf16.gmra.mxu1 %vm1027_vm1, %v987_v29  ;;  %v3183_v16 = vpop.eup %3182  ;;  %3208 = vtanh.f32 %v841_v28 }
 0x126   : > { %2963 = vmatprep.mubr.msk.bf16.mxu1 %vm1027_vm1, %v988_v7  ;;  %v3185_v27 = vpop.eup %3184  ;;  %v990_v19 = vpack.c.bf16 %v3183_v16, %v3181_v13  ;;  %3210 = vtanh.f32 %v854_v23  ;;  %v902_v7 = vadd.f32 %v2925_v3, %v3762_v36 }
 0x127   : > { %v989_v20 = vpack.c.bf16 %v3185_v27, %v3179_v12  ;;  %v3187_v24 = vpop.eup %3186  ;;  %3212 = vtanh.f32 %v862_v55 }
 0x128   : > { %v3189_v33 = vpop.eup %3188  ;;  %3214 = vtanh.f32 %v865_v52 }
 0x129   : > { %v3191_v26 = vpop.eup %3190  ;;  %3216 = vtanh.f32 %v857_v41 }
 0x12a   : > { %v3193_v31 = vpop.eup %3192  ;;  %v992_v46 = vpack.c.bf16 %v3191_v26, %v3189_v33  ;;  %3218 = vtanh.f32 %v870_v45 }
 0x12b   : > { %v991_v34 = vpack.c.bf16 %v3193_v31, %v3187_v24  ;;  %v3195_v37 = vpop.eup %3194  ;;  %3220 = vtanh.f32 %v878_v49 }
 0x12c   : > { %v3197_v38 = vpop.eup %3196  ;;  %3222 = vtanh.f32 %v881_v32 }
 0x12d   : > { %2964 = vmatmul.mubr.msk.bf16.gmra.mxu1 %vm1027_vm1, %v989_v20  ;;  %v3199_v39 = vpop.eup %3198  ;;  %3224 = vtanh.f32 %v873_v53 }
 0x12e   : > { %2967 = vmatprep.mubr.msk.bf16.mxu1 %vm1027_vm1, %v990_v19  ;;  %v3201_v42 = vpop.eup %3200  ;;  %v994_v8 = vpack.c.bf16 %v3199_v39, %v3197_v38  ;;  %3226 = vtanh.f32 %v886_v11 }
 0x12f   : > { %v993_v43 = vpack.c.bf16 %v3201_v42, %v3195_v37  ;;  %v3203_v47 = vpop.eup %3202  ;;  %3228 = vtanh.f32 %v894_v61 }
 0x130   : > { %v3205_v50 = vpop.eup %3204  ;;  %3230 = vtanh.f32 %v897_v62 }
 0x131   : > { %v3207_v54 = vpop.eup %3206  ;;  %3232 = vtanh.f32 %v889_v0 }
 0x132   : > { %v3209_v57 = vpop.eup %3208  ;;  %v996_v51 = vpack.c.bf16 %v3207_v54, %v3205_v50  ;;  %3234 = vtanh.f32 %v902_v7 }
 0x133   : > { %v995_v58 = vpack.c.bf16 %v3209_v57, %v3203_v47  ;;  %v3211_v21 = vpop.eup %3210  ;;  %3236 = vtanh.f32 %v905_v10 }
 0x134   : > { %v3213_v60 = vpop.eup %3212 }
 0x135   : > { %2968 = vmatmul.mubr.msk.bf16.gmra.mxu1 %vm1027_vm1, %v991_v34  ;;  %v3215_v63 = vpop.eup %3214 }
 0x136   : > { %2971 = vmatprep.mubr.msk.bf16.mxu1 %vm1027_vm1, %v992_v46  ;;  %v3217_v1 = vpop.eup %3216  ;;  %v998_v4 = vpack.c.bf16 %v3215_v63, %v3213_v60 }
 0x137   : > { %v997_v9 = vpack.c.bf16 %v3217_v1, %v3211_v21  ;;  %v3219_v5 = vpop.eup %3218 }
 0x138   : > { %v3221_v6 = vpop.eup %3220 }
 0x139   : > { %v3223_v29 = vpop.eup %3222 }
 0x13a   : > { %v3225_v40 = vpop.eup %3224  ;;  %v1000_v12 = vpack.c.bf16 %v3223_v29, %v3221_v6 }
 0x13b   : > { %v999_v15 = vpack.c.bf16 %v3225_v40, %v3219_v5  ;;  %v3227_v13 = vpop.eup %3226 }
 0x13c   : > { %v3229_v14 = vpop.eup %3228 }
 0x13d   : > { %2972 = vmatmul.mubr.msk.bf16.gmra.mxu1 %vm1027_vm1, %v993_v43  ;;  %v3231_v16 = vpop.eup %3230 }
 0x13e   : > { %2975 = vmatprep.mubr.msk.bf16.mxu1 %vm1027_vm1, %v994_v8  ;;  %v3233_v17 = vpop.eup %3232  ;;  %v1002_v18 = vpack.c.bf16 %v3231_v16, %v3229_v14 }
 0x13f   : > { %v1001_v27 = vpack.c.bf16 %v3233_v17, %v3227_v13  ;;  %v3235_v36 = vpop.eup %3234 }
 0x140   : > { %v3237_v19 = vpop.eup %3236 }
 0x141   : > { %v1003_v20 = vpack.c.bf16 %v3237_v19, %v3235_v36 }
 0x145   : > { %2976 = vmatmul.mubr.msk.bf16.gmra.mxu1 %vm1027_vm1, %v995_v58 }
 0x146   : > { %2979 = vmatprep.mubr.msk.bf16.mxu1 %vm1027_vm1, %v996_v51 }
 0x14d   : > { %2980 = vmatmul.mubr.msk.bf16.gmra.mxu1 %vm1027_vm1, %v997_v9 }
 0x14e   : > { %2983 = vmatprep.mubr.msk.bf16.mxu1 %vm1027_vm1, %v998_v4 }
 0x155   : > { %2984 = vmatmul.mubr.msk.bf16.gmra.mxu1 %vm1027_vm1, %v999_v15 }
 0x156   : > { %2987 = vmatprep.mubr.msk.bf16.mxu1 %vm1027_vm1, %v1000_v12 }
 0x15d   : > { %2988 = vmatmul.mubr.msk.bf16.gmra.mxu1 %vm1027_vm1, %v1001_v27 }
 0x15e   : > { %2991 = vmatprep.mubr.msk.bf16.mxu1 %vm1027_vm1, %v1002_v18 }
 0x165   : > { %2992 = vmatmul.mubr.msk.bf16.gmra.mxu1 %vm1027_vm1, %v1003_v20 }
 0x1ad   : > { %v2933_v48 = vpop.f32.mrf.mxu1 }
 0x1ae   : > { %v1167_v26 = vadd.f32 %v2933_v48, %v3938_v22 }
 0x1af   : > { %v1158_v24 = vpop.f32.mrf.mxu1 }
 0x1b0   : > { %v1159_v2 = vadd.f32 %v3938_v22, %v1158_v24 }
 0x1b1   : > { %v2934_v33 = vpop.f32.mrf.mxu1 }
 0x1b2   : > { %v1170_v25 = vadd.f32 %v2934_v33, %v3938_v22  ;;  %3238 = vtanh.f32 %v1159_v2 }
 0x1b3   : > { %v1161_v28 = vpop.f32.mrf.mxu1 }
 0x1b4   : > { %v1162_v30 = vadd.f32 %v3938_v22, %v1161_v28  ;;  %3240 = vtanh.f32 %v1170_v25 }
 0x1b5   : > { %v2937_v31 = vpop.f32.mrf.mxu1 }
 0x1b6   : > { %3242 = vtanh.f32 %v1162_v30  ;;  %v1183_v37 = vadd.f32 %v2937_v31, %v3938_v22 }
 0x1b7   : > { %3244 = vtanh.f32 %v1167_v26  ;;  %v1174_v46 = vpop.f32.mrf.mxu1 }
 0x1b8   : > { %v1175_v34 = vadd.f32 %v3938_v22, %v1174_v46 }
 0x1b9   : > { %v2938_v35 = vpop.f32.mrf.mxu1 }
 0x1ba   : > { %v1186_v23 = vadd.f32 %v2938_v35, %v3938_v22  ;;  %3246 = vtanh.f32 %v1175_v34 }
 0x1bb   : > { %v1177_v55 = vpop.f32.mrf.mxu1 }
 0x1bc   : > { %v1178_v38 = vadd.f32 %v3938_v22, %v1177_v55  ;;  %3248 = vtanh.f32 %v1186_v23 }
 0x1bd   : > { %v2941_v52 = vpop.f32.mrf.mxu1 }
 0x1be   : > { %3250 = vtanh.f32 %v1178_v38  ;;  %v1199_v45 = vadd.f32 %v2941_v52, %v3938_v22 }
 0x1bf   : > { %3252 = vtanh.f32 %v1183_v37  ;;  %v1190_v39 = vpop.f32.mrf.mxu1  ;;  %v3239_v3 = vpop.eup %3238 }
 0x1c0   : > { %v1191_v41 = vadd.f32 %v3938_v22, %v1190_v39 }
 0x1c1   : > { %v2942_v42 = vpop.f32.mrf.mxu1  ;;  %v3241_v8 = vpop.eup %3240 }
 0x1c2   : > { %v1202_v43 = vadd.f32 %v2942_v42, %v3938_v22  ;;  %3254 = vtanh.f32 %v1191_v41 }
 0x1c3   : > { %v3243_v44 = vpop.eup %3242  ;;  %v1193_v47 = vpop.f32.mrf.mxu1 }
 0x1c4   : > { %v3245_v49 = vpop.eup %3244  ;;  %v1194_v50 = vadd.f32 %v3938_v22, %v1193_v47  ;;  %v1477_v32 = vpack.c.bf16 %v3243_v44, %v3239_v3  ;;  %3256 = vtanh.f32 %v1202_v43 }
 0x1c5   : > { %v1478_v54 = vpack.c.bf16 %v3241_v8, %v3245_v49  ;;  %v2945_v53 = vpop.f32.mrf.mxu1 }
 0x1c6   : > { %3258 = vtanh.f32 %v1194_v50  ;;  %2999 = vmatprep.mubr.msk.bf16.mxu0 %vm1027_vm1, %v1477_v32  ;;  %v1215_v61 = vadd.f32 %v2945_v53, %v3938_v22 }
 0x1c7   : > { %3260 = vtanh.f32 %v1199_v45  ;;  %v1206_v56 = vpop.f32.mrf.mxu1  ;;  %3000 = vmatmul.mubr.msk.bf16.vlgmr.msra.gmra.mxu0 %vm1027_vm1, %v1478_v54  ;;  %v3247_v51 = vpop.eup %3246 }
 0x1c8   : > { %v1207_v57 = vadd.f32 %v3938_v22, %v1206_v56 }
 0x1c9   : > { %v2946_v58 = vpop.f32.mrf.mxu1  ;;  %v3249_v59 = vpop.eup %3248 }
 0x1ca   : > { %v1218_v11 = vadd.f32 %v2946_v58, %v3938_v22  ;;  %3262 = vtanh.f32 %v1207_v57 }
 0x1cb   : > { %v3251_v21 = vpop.eup %3250  ;;  %v1209_v60 = vpop.f32.mrf.mxu1 }
 0x1cc   : > { %v3253_v62 = vpop.eup %3252  ;;  %v1210_v63 = vadd.f32 %v3938_v22, %v1209_v60  ;;  %v1479_v0 = vpack.c.bf16 %v3251_v21, %v3247_v51  ;;  %3264 = vtanh.f32 %v1218_v11 }
 0x1cd   : > { %v2949_v1 = vpop.f32.mrf.mxu1  ;;  %v1480_v4 = vpack.c.bf16 %v3249_v59, %v3253_v62 }
 0x1ce   : > { %3266 = vtanh.f32 %v1210_v63  ;;  %3003 = vmatprep.mubr.msk.bf16.mxu0 %vm1027_vm1, %v1479_v0  ;;  %v1231_v12 = vadd.f32 %v2949_v1, %v3938_v22 }
 0x1cf   : > { %3268 = vtanh.f32 %v1215_v61  ;;  %v1222_v9 = vpop.f32.mrf.mxu1  ;;  %3004 = vmatmul.mubr.msk.bf16.gmra.mxu0 %vm1027_vm1, %v1480_v4  ;;  %v3255_v6 = vpop.eup %3254 }
 0x1d0   : > { %v1223_v5 = vadd.f32 %v3938_v22, %v1222_v9 }
 0x1d1   : > { %v2950_v7 = vpop.f32.mrf.mxu1  ;;  %v3257_v29 = vpop.eup %3256 }
 0x1d2   : > { %v1234_v10 = vadd.f32 %v2950_v7, %v3938_v22  ;;  %3270 = vtanh.f32 %v1223_v5 }
 0x1d3   : > { %v3259_v40 = vpop.eup %3258  ;;  %v1225_v15 = vpop.f32.mrf.mxu1 }
 0x1d4   : > { %v3261_v13 = vpop.eup %3260  ;;  %v1226_v14 = vadd.f32 %v3938_v22, %v1225_v15  ;;  %v1481_v16 = vpack.c.bf16 %v3259_v40, %v3255_v6  ;;  %3272 = vtanh.f32 %v1234_v10 }
 0x1d5   : > { %v2953_v17 = vpop.f32.mrf.mxu1  ;;  %v1482_v18 = vpack.c.bf16 %v3257_v29, %v3261_v13 }
 0x1d6   : > { %3274 = vtanh.f32 %v1226_v14  ;;  %3007 = vmatprep.mubr.msk.bf16.mxu0 %vm1027_vm1, %v1481_v16  ;;  %v1247_v33 = vadd.f32 %v2953_v17, %v3938_v22 }
 0x1d7   : > { %3276 = vtanh.f32 %v1231_v12  ;;  %v1238_v27 = vpop.f32.mrf.mxu1  ;;  %3008 = vmatmul.mubr.msk.bf16.gmra.mxu0 %vm1027_vm1, %v1482_v18  ;;  %v3263_v19 = vpop.eup %3262 }
 0x1d8   : > { %v1239_v36 = vadd.f32 %v3938_v22, %v1238_v27 }
 0x1d9   : > { %v2954_v20 = vpop.f32.mrf.mxu1  ;;  %v3265_v48 = vpop.eup %3264 }
 0x1da   : > { %v1250_v24 = vadd.f32 %v2954_v20, %v3938_v22  ;;  %3278 = vtanh.f32 %v1239_v36 }
 0x1db   : > { %v3267_v2 = vpop.eup %3266  ;;  %v1241_v25 = vpop.f32.mrf.mxu1 }
 0x1dc   : > { %v3269_v26 = vpop.eup %3268  ;;  %v1242_v28 = vadd.f32 %v3938_v22, %v1241_v25  ;;  %v1483_v30 = vpack.c.bf16 %v3267_v2, %v3263_v19  ;;  %3280 = vtanh.f32 %v1250_v24 }
 0x1dd   : > { %v2957_v31 = vpop.f32.mrf.mxu1  ;;  %v1484_v46 = vpack.c.bf16 %v3265_v48, %v3269_v26 }
 0x1de   : > { %3282 = vtanh.f32 %v1242_v28  ;;  %3011 = vmatprep.mubr.msk.bf16.mxu0 %vm1027_vm1, %v1483_v30  ;;  %v1263_v39 = vadd.f32 %v2957_v31, %v3938_v22 }
 0x1df   : > { %3284 = vtanh.f32 %v1247_v33  ;;  %v1254_v34 = vpop.f32.mrf.mxu1  ;;  %3012 = vmatmul.mubr.msk.bf16.gmra.mxu0 %vm1027_vm1, %v1484_v46  ;;  %v3271_v23 = vpop.eup %3270 }
 0x1e0   : > { %v1255_v35 = vadd.f32 %v3938_v22, %v1254_v34 }
 0x1e1   : > { %v2958_v37 = vpop.f32.mrf.mxu1  ;;  %v3273_v55 = vpop.eup %3272 }
 0x1e2   : > { %v1266_v38 = vadd.f32 %v2958_v37, %v3938_v22  ;;  %3286 = vtanh.f32 %v1255_v35 }
 0x1e3   : > { %v3275_v52 = vpop.eup %3274  ;;  %v1257_v41 = vpop.f32.mrf.mxu1 }
 0x1e4   : > { %v3277_v3 = vpop.eup %3276  ;;  %v1258_v42 = vadd.f32 %v3938_v22, %v1257_v41  ;;  %v1485_v8 = vpack.c.bf16 %v3275_v52, %v3271_v23  ;;  %3288 = vtanh.f32 %v1266_v38 }
 0x1e5   : > { %v2961_v43 = vpop.f32.mrf.mxu1  ;;  %v1486_v44 = vpack.c.bf16 %v3273_v55, %v3277_v3 }
 0x1e6   : > { %3290 = vtanh.f32 %v1258_v42  ;;  %3015 = vmatprep.mubr.msk.bf16.mxu0 %vm1027_vm1, %v1485_v8  ;;  %v1279_v56 = vadd.f32 %v2961_v43, %v3938_v22 }
 0x1e7   : > { %3292 = vtanh.f32 %v1263_v39  ;;  %v1270_v45 = vpop.f32.mrf.mxu1  ;;  %3016 = vmatmul.mubr.msk.bf16.gmra.mxu0 %vm1027_vm1, %v1486_v44  ;;  %v3279_v49 = vpop.eup %3278 }
 0x1e8   : > { %v1271_v47 = vadd.f32 %v3938_v22, %v1270_v45 }
 0x1e9   : > { %v2962_v50 = vpop.f32.mrf.mxu1  ;;  %v3281_v32 = vpop.eup %3280 }
 0x1ea   : > { %v1282_v54 = vadd.f32 %v2962_v50, %v3938_v22  ;;  %3294 = vtanh.f32 %v1271_v47 }
 0x1eb   : > { %v3283_v53 = vpop.eup %3282  ;;  %v1273_v57 = vpop.f32.mrf.mxu1 }
 0x1ec   : > { %v3285_v51 = vpop.eup %3284  ;;  %v1274_v58 = vadd.f32 %v3938_v22, %v1273_v57  ;;  %v1487_v59 = vpack.c.bf16 %v3283_v53, %v3279_v49  ;;  %3296 = vtanh.f32 %v1282_v54 }
 0x1ed   : > { %v2965_v11 = vpop.f32.mrf.mxu1  ;;  %v1488_v21 = vpack.c.bf16 %v3281_v32, %v3285_v51 }
 0x1ee   : > { %3298 = vtanh.f32 %v1274_v58  ;;  %3019 = vmatprep.mubr.msk.bf16.mxu0 %vm1027_vm1, %v1487_v59  ;;  %v1295_v9 = vadd.f32 %v2965_v11, %v3938_v22 }
 0x1ef   : > { %3300 = vtanh.f32 %v1279_v56  ;;  %v1286_v61 = vpop.f32.mrf.mxu1  ;;  %3020 = vmatmul.mubr.msk.bf16.gmra.mxu0 %vm1027_vm1, %v1488_v21  ;;  %v3287_v62 = vpop.eup %3286 }
 0x1f0   : > { %v1287_v60 = vadd.f32 %v3938_v22, %v1286_v61 }
 0x1f1   : > { %v2966_v63 = vpop.f32.mrf.mxu1  ;;  %v3289_v0 = vpop.eup %3288 }
 0x1f2   : > { %v1298_v1 = vadd.f32 %v2966_v63, %v3938_v22  ;;  %3302 = vtanh.f32 %v1287_v60 }
 0x1f3   : > { %v3291_v4 = vpop.eup %3290  ;;  %v1289_v5 = vpop.f32.mrf.mxu1 }
 0x1f4   : > { %v3293_v6 = vpop.eup %3292  ;;  %v1290_v7 = vadd.f32 %v3938_v22, %v1289_v5  ;;  %v1489_v29 = vpack.c.bf16 %v3291_v4, %v3287_v62  ;;  %3304 = vtanh.f32 %v1298_v1 }
 0x1f5   : > { %v2969_v10 = vpop.f32.mrf.mxu1  ;;  %v1490_v40 = vpack.c.bf16 %v3289_v0, %v3293_v6 }
 0x1f6   : > { %3306 = vtanh.f32 %v1290_v7  ;;  %3023 = vmatprep.mubr.msk.bf16.mxu0 %vm1027_vm1, %v1489_v29  ;;  %v1311_v27 = vadd.f32 %v2969_v10, %v3938_v22 }
 0x1f7   : > { %3308 = vtanh.f32 %v1295_v9  ;;  %v1302_v12 = vpop.f32.mrf.mxu1  ;;  %3024 = vmatmul.mubr.msk.bf16.gmra.mxu0 %vm1027_vm1, %v1490_v40  ;;  %v3295_v13 = vpop.eup %3294 }
 0x1f8   : > { %v1303_v15 = vadd.f32 %v3938_v22, %v1302_v12 }
 0x1f9   : > { %v2970_v14 = vpop.f32.mrf.mxu1  ;;  %v3297_v16 = vpop.eup %3296 }
 0x1fa   : > { %v1314_v17 = vadd.f32 %v2970_v14, %v3938_v22  ;;  %3310 = vtanh.f32 %v1303_v15 }
 0x1fb   : > { %v3299_v18 = vpop.eup %3298  ;;  %v1305_v36 = vpop.f32.mrf.mxu1 }
 0x1fc   : > { %v3301_v19 = vpop.eup %3300  ;;  %v1306_v20 = vadd.f32 %v3938_v22, %v1305_v36  ;;  %v1491_v48 = vpack.c.bf16 %v3299_v18, %v3295_v13  ;;  %3312 = vtanh.f32 %v1314_v17 }
 0x1fd   : > { %v2973_v24 = vpop.f32.mrf.mxu1  ;;  %v1492_v2 = vpack.c.bf16 %v3297_v16, %v3301_v19 }
 0x1fe   : > { %3314 = vtanh.f32 %v1306_v20  ;;  %3027 = vmatprep.mubr.msk.bf16.mxu0 %vm1027_vm1, %v1491_v48  ;;  %v1327_v34 = vadd.f32 %v2973_v24, %v3938_v22 }
 0x1ff   : > { %3316 = vtanh.f32 %v1311_v27  ;;  %v1318_v33 = vpop.f32.mrf.mxu1  ;;  %3028 = vmatmul.mubr.msk.bf16.gmra.mxu0 %vm1027_vm1, %v1492_v2  ;;  %v3303_v26 = vpop.eup %3302 }
 0x200   : > { %v1319_v25 = vadd.f32 %v3938_v22, %v1318_v33 }
 0x201   : > { %v2974_v28 = vpop.f32.mrf.mxu1  ;;  %v3305_v30 = vpop.eup %3304 }
 0x202   : > { %v1330_v31 = vadd.f32 %v2974_v28, %v3938_v22  ;;  %3318 = vtanh.f32 %v1319_v25 }
 0x203   : > { %v3307_v46 = vpop.eup %3306  ;;  %v1321_v35 = vpop.f32.mrf.mxu1 }
 0x204   : > { %v3309_v23 = vpop.eup %3308  ;;  %v1322_v37 = vadd.f32 %v3938_v22, %v1321_v35  ;;  %v1493_v55 = vpack.c.bf16 %v3307_v46, %v3303_v26  ;;  %3320 = vtanh.f32 %v1330_v31 }
 0x205   : > { %v2977_v38 = vpop.f32.mrf.mxu1  ;;  %v1494_v52 = vpack.c.bf16 %v3305_v30, %v3309_v23 }
 0x206   : > { %3322 = vtanh.f32 %v1322_v37  ;;  %3031 = vmatprep.mubr.msk.bf16.mxu0 %vm1027_vm1, %v1493_v55  ;;  %v1343_v45 = vadd.f32 %v2977_v38, %v3938_v22 }
 0x207   : > { %3324 = vtanh.f32 %v1327_v34  ;;  %v1334_v39 = vpop.f32.mrf.mxu1  ;;  %3032 = vmatmul.mubr.msk.bf16.gmra.mxu0 %vm1027_vm1, %v1494_v52  ;;  %v3311_v3 = vpop.eup %3310 }
 0x208   : > { %v1335_v41 = vadd.f32 %v3938_v22, %v1334_v39 }
 0x209   : > { %v2978_v42 = vpop.f32.mrf.mxu1  ;;  %v3313_v8 = vpop.eup %3312 }
 0x20a   : > { %v1346_v43 = vadd.f32 %v2978_v42, %v3938_v22  ;;  %3326 = vtanh.f32 %v1335_v41 }
 0x20b   : > { %v3315_v44 = vpop.eup %3314  ;;  %v1337_v47 = vpop.f32.mrf.mxu1 }
 0x20c   : > { %v3317_v49 = vpop.eup %3316  ;;  %v1338_v50 = vadd.f32 %v3938_v22, %v1337_v47  ;;  %v1495_v32 = vpack.c.bf16 %v3315_v44, %v3311_v3  ;;  %3328 = vtanh.f32 %v1346_v43 }
 0x20d   : > { %v2981_v54 = vpop.f32.mrf.mxu1  ;;  %v1496_v53 = vpack.c.bf16 %v3313_v8, %v3317_v49 }
 0x20e   : > { %3330 = vtanh.f32 %v1338_v50  ;;  %3035 = vmatprep.mubr.msk.bf16.mxu0 %vm1027_vm1, %v1495_v32  ;;  %v1359_v61 = vadd.f32 %v2981_v54, %v3938_v22 }
 0x20f   : > { %3332 = vtanh.f32 %v1343_v45  ;;  %v1350_v56 = vpop.f32.mrf.mxu1  ;;  %3036 = vmatmul.mubr.msk.bf16.gmra.mxu0 %vm1027_vm1, %v1496_v53  ;;  %v3319_v51 = vpop.eup %3318 }
 0x210   : > { %v1351_v57 = vadd.f32 %v3938_v22, %v1350_v56 }
 0x211   : > { %v2982_v58 = vpop.f32.mrf.mxu1  ;;  %v3321_v59 = vpop.eup %3320 }
 0x212   : > { %v1362_v11 = vadd.f32 %v2982_v58, %v3938_v22  ;;  %3334 = vtanh.f32 %v1351_v57  ;;  %v4039_v58 = vld [vmem:[%s4696_s6] ss:$0 sm:$0xff] }
 0x213   : > { %v3323_v21 = vpop.eup %3322  ;;  %v1353_v60 = vpop.f32.mrf.mxu1 }
 0x214   : > { %v3325_v62 = vpop.eup %3324  ;;  %v1354_v63 = vadd.f32 %v3938_v22, %v1353_v60  ;;  %v1497_v0 = vpack.c.bf16 %v3323_v21, %v3319_v51  ;;  %3336 = vtanh.f32 %v1362_v11 }
 0x215   : > { %v2985_v1 = vpop.f32.mrf.mxu1  ;;  %v1498_v4 = vpack.c.bf16 %v3321_v59, %v3325_v62 }
 0x216   : > { %3338 = vtanh.f32 %v1354_v63  ;;  %3039 = vmatprep.mubr.msk.bf16.mxu0 %vm1027_vm1, %v1497_v0  ;;  %v1375_v12 = vadd.f32 %v2985_v1, %v3938_v22 }
 0x217   : > { %3340 = vtanh.f32 %v1359_v61  ;;  %v1366_v9 = vpop.f32.mrf.mxu1  ;;  %3040 = vmatmul.mubr.msk.bf16.gmra.mxu0 %vm1027_vm1, %v1498_v4  ;;  %v3327_v6 = vpop.eup %3326 }
 0x218   : > { %v1367_v5 = vadd.f32 %v3938_v22, %v1366_v9 }
 0x219   : > { %v2986_v7 = vpop.f32.mrf.mxu1  ;;  %v3329_v29 = vpop.eup %3328 }
 0x21a   : > { %v1378_v10 = vadd.f32 %v2986_v7, %v3938_v22  ;;  %3342 = vtanh.f32 %v1367_v5 }
 0x21b   : > { %v3331_v40 = vpop.eup %3330  ;;  %v1369_v15 = vpop.f32.mrf.mxu1 }
 0x21c   : > { %v3333_v13 = vpop.eup %3332  ;;  %v1370_v14 = vadd.f32 %v3938_v22, %v1369_v15  ;;  %v1499_v16 = vpack.c.bf16 %v3331_v40, %v3327_v6  ;;  %3344 = vtanh.f32 %v1378_v10 }
 0x21d   : > { %v2989_v17 = vpop.f32.mrf.mxu1  ;;  %v1500_v18 = vpack.c.bf16 %v3329_v29, %v3333_v13 }
 0x21e   : > { %3346 = vtanh.f32 %v1370_v14  ;;  %3043 = vmatprep.mubr.msk.bf16.mxu0 %vm1027_vm1, %v1499_v16  ;;  %v1391_v33 = vadd.f32 %v2989_v17, %v3938_v22 }
 0x21f   : > { %3348 = vtanh.f32 %v1375_v12  ;;  %v1382_v27 = vpop.f32.mrf.mxu1  ;;  %3044 = vmatmul.mubr.msk.bf16.gmra.mxu0 %vm1027_vm1, %v1500_v18  ;;  %v3335_v19 = vpop.eup %3334 }
 0x220   : > { %v1383_v36 = vadd.f32 %v3938_v22, %v1382_v27 }
 0x221   : > { %v2990_v20 = vpop.f32.mrf.mxu1  ;;  %v3337_v48 = vpop.eup %3336 }
 0x222   : > { %v1394_v24 = vadd.f32 %v2990_v20, %v3938_v22  ;;  %3350 = vtanh.f32 %v1383_v36 }
 0x223   : > { %v3339_v2 = vpop.eup %3338  ;;  %v1385_v25 = vpop.f32.mrf.mxu1 }
 0x224   : > { %v3341_v26 = vpop.eup %3340  ;;  %v1386_v28 = vadd.f32 %v3938_v22, %v1385_v25  ;;  %v1501_v30 = vpack.c.bf16 %v3339_v2, %v3335_v19  ;;  %3352 = vtanh.f32 %v1394_v24 }
 0x225   : > { %v2993_v31 = vpop.f32.mrf.mxu1  ;;  %v1502_v46 = vpack.c.bf16 %v3337_v48, %v3341_v26 }
 0x226   : > { %3354 = vtanh.f32 %v1386_v28  ;;  %3047 = vmatprep.mubr.msk.bf16.mxu0 %vm1027_vm1, %v1501_v30  ;;  %v1407_v39 = vadd.f32 %v2993_v31, %v3938_v22 }
 0x227   : > { %3356 = vtanh.f32 %v1391_v33  ;;  %v1398_v34 = vpop.f32.mrf.mxu1  ;;  %3048 = vmatmul.mubr.msk.bf16.gmra.mxu0 %vm1027_vm1, %v1502_v46  ;;  %v3343_v23 = vpop.eup %3342 }
 0x228   : > { %v1399_v35 = vadd.f32 %v3938_v22, %v1398_v34 }
 0x229   : > { %v2994_v37 = vpop.f32.mrf.mxu1  ;;  %v3345_v55 = vpop.eup %3344 }
 0x22a   : > { %v1410_v38 = vadd.f32 %v2994_v37, %v3938_v22  ;;  %3358 = vtanh.f32 %v1399_v35 }
 0x22b   : > { %v3347_v52 = vpop.eup %3346  ;;  %v1401_v41 = vpop.f32.mrf.mxu1 }
 0x22c   : > { %v3349_v3 = vpop.eup %3348  ;;  %v1402_v42 = vadd.f32 %v3938_v22, %v1401_v41  ;;  %v1503_v8 = vpack.c.bf16 %v3347_v52, %v3343_v23  ;;  %3360 = vtanh.f32 %v1410_v38 }
 0x22d   : > { %v1504_v43 = vpack.c.bf16 %v3345_v55, %v3349_v3 }
 0x22e   : > { %3362 = vtanh.f32 %v1402_v42  ;;  %3051 = vmatprep.mubr.msk.bf16.mxu0 %vm1027_vm1, %v1503_v8 }
 0x22f   : > { %3364 = vtanh.f32 %v1407_v39  ;;  %3052 = vmatmul.mubr.msk.bf16.gmra.mxu0 %vm1027_vm1, %v1504_v43  ;;  %v3351_v44 = vpop.eup %3350 }
 0x231   : > { %v3353_v45 = vpop.eup %3352 }
 0x233   : > { %v3355_v47 = vpop.eup %3354 }
 0x234   : > { %v3357_v49 = vpop.eup %3356  ;;  %v1505_v50 = vpack.c.bf16 %v3355_v47, %v3351_v44 }
 0x235   : > { %v1506_v32 = vpack.c.bf16 %v3353_v45, %v3357_v49 }
 0x236   : > { %3055 = vmatprep.mubr.msk.bf16.mxu0 %vm1027_vm1, %v1505_v50 }
 0x237   : > { %3056 = vmatmul.mubr.msk.bf16.gmra.mxu0 %vm1027_vm1, %v1506_v32  ;;  %v3359_v22 = vpop.eup %3358 }
 0x239   : > { %v3361_v54 = vpop.eup %3360 }
 0x23b   : > { %v3363_v53 = vpop.eup %3362 }
 0x23c   : > { %v3365_v56 = vpop.eup %3364  ;;  %v1507_v57 = vpack.c.bf16 %v3363_v53, %v3359_v22 }
 0x23d   : > { %v1508_v51 = vpack.c.bf16 %v3361_v54, %v3365_v56 }
 0x23e   : > { %3059 = vmatprep.mubr.msk.bf16.mxu0 %vm1027_vm1, %v1507_v57 }
 0x23f   : > { %3060 = vmatmul.mubr.msk.bf16.gmra.mxu0 %vm1027_vm1, %v1508_v51 }
 0x287   : > { %v3001_v59 = vpop.f32.mrf.mxu0 }
 0x288   : > { %v4042_v11 = vadd.f32 %v3001_v59, %v4039_v58 }
 0x289   : > { %v1662_v21 = vpop.f32.mrf.mxu0 }
 0x28a   : > { %v4045_v61 = vadd.f32 %v4039_v58, %v1662_v21  ;;  %1921 = vmax.xlane.f32.xlu1 %v4042_v11 }
 0x28b   : > { %v3002_v60 = vpop.f32.mrf.mxu0 }
 0x28c   : > { %v4049_v62 = vadd.f32 %v3002_v60, %v4039_v58  ;;  %1917 = vmax.xlane.f32.xlu0 %v4045_v61 }
 0x28d   : > { %v1665_v63 = vpop.f32.mrf.mxu0 }
 0x28e   : > { %v4053_v0 = vadd.f32 %v4039_v58, %v1665_v63  ;;  %1923 = vmax.xlane.f32.xlu1 %v4049_v62 }
 0x28f   : > { %v3005_v1 = vpop.f32.mrf.mxu0 }
 0x290   : > { %1919 = vmax.xlane.f32.xlu0 %v4053_v0  ;;  %v4058_v9 = vadd.f32 %v3005_v1, %v4039_v58 }
 0x291   : > { %v1678_v4 = vpop.f32.mrf.mxu0 }
 0x292   : > { %v4065_v29 = vadd.f32 %v4039_v58, %v1678_v4 }
 0x293   : > { %v3006_v5 = vpop.f32.mrf.mxu0 }
 0x294   : > { %v4061_v6 = vadd.f32 %v3006_v5, %v4039_v58  ;;  %1929 = vmax.xlane.f32.xlu0 %v4058_v9 }
 0x295   : > { %v1681_v7 = vpop.f32.mrf.mxu0 }
 0x296   : > { %1931 = vmax.xlane.f32.xlu1 %v4061_v6  ;;  %v4069_v40 = vadd.f32 %v4039_v58, %v1681_v7 }
 0x297   : > { %v3009_v10 = vpop.f32.mrf.mxu0 }
 0x298   : > { %1925 = vmax.xlane.f32.xlu0 %v4065_v29  ;;  %v4073_v15 = vadd.f32 %v3009_v10, %v4039_v58 }
 0x299   : > { %v1694_v12 = vpop.f32.mrf.mxu0 }
 0x29a   : > { %1927 = vmax.xlane.f32.xlu1 %v4069_v40  ;;  %v4081_v17 = vadd.f32 %v4039_v58, %v1694_v12 }
 0x29b   : > { %v3010_v13 = vpop.f32.mrf.mxu0 }
 0x29c   : > { %v4077_v14 = vadd.f32 %v3010_v13, %v4039_v58  ;;  %1937 = vmax.xlane.f32.xlu0 %v4073_v15 }
 0x29d   : > { %v1697_v16 = vpop.f32.mrf.mxu0 }
 0x29e   : > { %1939 = vmax.xlane.f32.xlu1 %v4077_v14  ;;  %v4085_v27 = vadd.f32 %v4039_v58, %v1697_v16 }
 0x29f   : > { %v3013_v18 = vpop.f32.mrf.mxu0 }
 0x2a0   : > { %1933 = vmax.xlane.f32.xlu0 %v4081_v17  ;;  %v4089_v19 = vadd.f32 %v3013_v18, %v4039_v58 }
 0x2a1   : > { %v1710_v36 = vpop.f32.mrf.mxu0 }
 0x2a2   : > { %1935 = vmax.xlane.f32.xlu1 %v4085_v27  ;;  %v4097_v2 = vadd.f32 %v4039_v58, %v1710_v36 }
 0x2a3   : > { %v3014_v20 = vpop.f32.mrf.mxu0 }
 0x2a4   : > { %v4093_v48 = vadd.f32 %v3014_v20, %v4039_v58  ;;  %1945 = vmax.xlane.f32.xlu0 %v4089_v19 }
 0x2a5   : > { %v1713_v24 = vpop.f32.mrf.mxu0 }
 0x2a6   : > { %1947 = vmax.xlane.f32.xlu1 %v4093_v48  ;;  %v4101_v25 = vadd.f32 %v4039_v58, %v1713_v24 }
 0x2a7   : > { %v3017_v33 = vpop.f32.mrf.mxu0 }
 0x2a8   : > { %1941 = vmax.xlane.f32.xlu0 %v4097_v2  ;;  %v4105_v28 = vadd.f32 %v3017_v33, %v4039_v58 }
 0x2a9   : > { %v1726_v26 = vpop.f32.mrf.mxu0 }
 0x2aa   : > { %1943 = vmax.xlane.f32.xlu1 %v4101_v25  ;;  %v4113_v34 = vadd.f32 %v4039_v58, %v1726_v26 }
 0x2ab   : > { %v3018_v30 = vpop.f32.mrf.mxu0 }
 0x2ac   : > { %v4109_v31 = vadd.f32 %v3018_v30, %v4039_v58  ;;  %1953 = vmax.xlane.f32.xlu0 %v4105_v28 }
 0x2ad   : > { %v1729_v46 = vpop.f32.mrf.mxu0 }
 0x2ae   : > { %1955 = vmax.xlane.f32.xlu1 %v4109_v31  ;;  %v4117_v23 = vadd.f32 %v4039_v58, %v1729_v46 }
 0x2af   : > { %v3021_v35 = vpop.f32.mrf.mxu0 }
 0x2b0   : > { %1949 = vmax.xlane.f32.xlu0 %v4113_v34  ;;  %v4121_v55 = vadd.f32 %v3021_v35, %v4039_v58 }
 0x2b1   : > { %v1742_v37 = vpop.f32.mrf.mxu0 }
 0x2b2   : > { %1951 = vmax.xlane.f32.xlu1 %v4117_v23  ;;  %v4129_v41 = vadd.f32 %v4039_v58, %v1742_v37 }
 0x2b3   : > { %v3022_v38 = vpop.f32.mrf.mxu0 }
 0x2b4   : > { %v4125_v52 = vadd.f32 %v3022_v38, %v4039_v58  ;;  %1961 = vmax.xlane.f32.xlu0 %v4121_v55 }
 0x2b5   : > { %v1745_v39 = vpop.f32.mrf.mxu0 }
 0x2b6   : > { %1963 = vmax.xlane.f32.xlu1 %v4125_v52  ;;  %v4133_v42 = vadd.f32 %v4039_v58, %v1745_v39 }
 0x2b7   : > { %v3025_v3 = vpop.f32.mrf.mxu0 }
 0x2b8   : > { %1957 = vmax.xlane.f32.xlu0 %v4129_v41  ;;  %v4137_v43 = vadd.f32 %v3025_v3, %v4039_v58 }
 0x2b9   : > { %v1758_v8 = vpop.f32.mrf.mxu0 }
 0x2ba   : > { %1959 = vmax.xlane.f32.xlu1 %v4133_v42  ;;  %v4145_v49 = vadd.f32 %v4039_v58, %v1758_v8 }
 0x2bb   : > { %v3026_v44 = vpop.f32.mrf.mxu0 }
 0x2bc   : > { %v4141_v45 = vadd.f32 %v3026_v44, %v4039_v58  ;;  %1969 = vmax.xlane.f32.xlu0 %v4137_v43 }
 0x2bd   : > { %v1761_v47 = vpop.f32.mrf.mxu0 }
 0x2be   : > { %1971 = vmax.xlane.f32.xlu1 %v4141_v45  ;;  %v4149_v32 = vadd.f32 %v4039_v58, %v1761_v47 }
 0x2bf   : > { %v3029_v50 = vpop.f32.mrf.mxu0 }
 0x2c0   : > { %1965 = vmax.xlane.f32.xlu0 %v4145_v49  ;;  %v4153_v54 = vadd.f32 %v3029_v50, %v4039_v58 }
 0x2c1   : > { %v1774_v22 = vpop.f32.mrf.mxu0 }
 0x2c2   : > { %1967 = vmax.xlane.f32.xlu1 %v4149_v32  ;;  %v4161_v51 = vadd.f32 %v4039_v58, %v1774_v22 }
 0x2c3   : > { %v3030_v53 = vpop.f32.mrf.mxu0 }
 0x2c4   : > { %v4157_v56 = vadd.f32 %v3030_v53, %v4039_v58  ;;  %1977 = vmax.xlane.f32.xlu0 %v4153_v54 }
 0x2c5   : > { %v1777_v57 = vpop.f32.mrf.mxu0 }
 0x2c6   : > { %1979 = vmax.xlane.f32.xlu1 %v4157_v56  ;;  %v4165_v21 = vadd.f32 %v4039_v58, %v1777_v57 }
 0x2c7   : > { %v3033_v59 = vpop.f32.mrf.mxu0 }
 0x2c8   : > { %1973 = vmax.xlane.f32.xlu0 %v4161_v51  ;;  %v4169_v63 = vadd.f32 %v3033_v59, %v4039_v58 }
 0x2c9   : > { %v1790_v60 = vpop.f32.mrf.mxu0 }
 0x2ca   : > { %1975 = vmax.xlane.f32.xlu1 %v4165_v21  ;;  %v4177_v7 = vadd.f32 %v4039_v58, %v1790_v60 }
 0x2cb   : > { %v3034_v1 = vpop.f32.mrf.mxu0 }
 0x2cc   : > { %v4173_v4 = vadd.f32 %v3034_v1, %v4039_v58  ;;  %1985 = vmax.xlane.f32.xlu0 %v4169_v63 }
 0x2cd   : > { %v1793_v5 = vpop.f32.mrf.mxu0 }
 0x2ce   : > { %1987 = vmax.xlane.f32.xlu1 %v4173_v4  ;;  %v4181_v12 = vadd.f32 %v4039_v58, %v1793_v5 }
 0x2cf   : > { %v3037_v10 = vpop.f32.mrf.mxu0 }
 0x2d0   : > { %1981 = vmax.xlane.f32.xlu0 %v4177_v7  ;;  %v4185_v16 = vadd.f32 %v3037_v10, %v4039_v58 }
 0x2d1   : > { %v1806_v13 = vpop.f32.mrf.mxu0 }
 0x2d2   : > { %1983 = vmax.xlane.f32.xlu1 %v4181_v12  ;;  %v4193_v24 = vadd.f32 %v4039_v58, %v1806_v13 }
 0x2d3   : > { %v3038_v18 = vpop.f32.mrf.mxu0 }
 0x2d4   : > { %v4189_v36 = vadd.f32 %v3038_v18, %v4039_v58  ;;  %1993 = vmax.xlane.f32.xlu0 %v4185_v16 }
 0x2d5   : > { %v1809_v20 = vpop.f32.mrf.mxu0 }
 0x2d6   : > { %1995 = vmax.xlane.f32.xlu1 %v4189_v36  ;;  %v4197_v26 = vadd.f32 %v4039_v58, %v1809_v20 }
 0x2d7   : > { %v3041_v33 = vpop.f32.mrf.mxu0 }
 0x2d8   : > { %1989 = vmax.xlane.f32.xlu0 %v4193_v24  ;;  %v4201_v46 = vadd.f32 %v3041_v33, %v4039_v58 }
 0x2d9   : > { %v1822_v30 = vpop.f32.mrf.mxu0 }
 0x2da   : > { %1991 = vmax.xlane.f32.xlu1 %v4197_v26  ;;  %v4209_v39 = vadd.f32 %v4039_v58, %v1822_v30 }
 0x2db   : > { %v3042_v35 = vpop.f32.mrf.mxu0 }
 0x2dc   : > { %v4205_v37 = vadd.f32 %v3042_v35, %v4039_v58  ;;  %2001 = vmax.xlane.f32.xlu0 %v4201_v46 }
 0x2dd   : > { %v1825_v38 = vpop.f32.mrf.mxu0 }
 0x2de   : > { %2003 = vmax.xlane.f32.xlu1 %v4205_v37  ;;  %v4213_v8 = vadd.f32 %v4039_v58, %v1825_v38 }
 0x2df   : > { %v3045_v3 = vpop.f32.mrf.mxu0 }
 0x2e0   : > { %1997 = vmax.xlane.f32.xlu0 %v4209_v39  ;;  %v4217_v47 = vadd.f32 %v3045_v3, %v4039_v58 }
 0x2e1   : > { %v1838_v44 = vpop.f32.mrf.mxu0 }
 0x2e2   : > { %1999 = vmax.xlane.f32.xlu1 %v4213_v8  ;;  %v4225_v57 = vadd.f32 %v4039_v58, %v1838_v44 }
 0x2e3   : > { %v3046_v50 = vpop.f32.mrf.mxu0 }
 0x2e4   : > { %v4221_v22 = vadd.f32 %v3046_v50, %v4039_v58  ;;  %2009 = vmax.xlane.f32.xlu0 %v4217_v47 }
 0x2e5   : > { %v1841_v53 = vpop.f32.mrf.mxu0 }
 0x2e6   : > { %2011 = vmax.xlane.f32.xlu1 %v4221_v22  ;;  %v4229_v60 = vadd.f32 %v4039_v58, %v1841_v53 }
 0x2e7   : > { %v3049_v59 = vpop.f32.mrf.mxu0 }
 0x2e8   : > { %2005 = vmax.xlane.f32.xlu0 %v4225_v57  ;;  %v4233_v5 = vadd.f32 %v3049_v59, %v4039_v58 }
 0x2e9   : > { %v1854_v1 = vpop.f32.mrf.mxu0 }
 0x2ea   : > { %2007 = vmax.xlane.f32.xlu1 %v4229_v60  ;;  %v4241_v20 = vadd.f32 %v4039_v58, %v1854_v1 }
 0x2eb   : > { %v3050_v10 = vpop.f32.mrf.mxu0 }
 0x2ec   : > { %v4237_v13 = vadd.f32 %v3050_v10, %v4039_v58  ;;  %2017 = vmax.xlane.f32.xlu0 %v4233_v5  ;;  %4723 = vst [vmem:[#allocation2_spill] sm:$0xff] %v4241_v20 }
 0x2ed   : > { %v1857_v18 = vpop.f32.mrf.mxu0 }
 0x2ee   : > { %2019 = vmax.xlane.f32.xlu1 %v4237_v13  ;;  %v4245_v30 = vadd.f32 %v4039_v58, %v1857_v18 }
 0x2ef   : > { %v3053_v33 = vpop.f32.mrf.mxu0 }
 0x2f0   : > { %4724 = vst [vmem:[#allocation3_spill] sm:$0xff] %v4245_v30  ;;  %2013 = vmax.xlane.f32.xlu0 %v4241_v20  ;;  %v4249_v38 = vadd.f32 %v3053_v33, %v4039_v58 }
 0x2f1   : > { %v1870_v35 = vpop.f32.mrf.mxu0 }
 0x2f2   : > { %4725 = vst [vmem:[#allocation4_spill] sm:$0xff] %v4249_v38  ;;  %2015 = vmax.xlane.f32.xlu1 %v4245_v30  ;;  %v4257_v53 = vadd.f32 %v4039_v58, %v1870_v35 }
 0x2f3   : > { %v3054_v3 = vpop.f32.mrf.mxu0 }
 0x2f4   : > { %v4253_v44 = vadd.f32 %v3054_v3, %v4039_v58  ;;  %2025 = vmax.xlane.f32.xlu0 %v4249_v38  ;;  %4727 = vst [vmem:[#allocation6_spill] sm:$0xff] %v4257_v53 }
 0x2f5   : > { %v1873_v50 = vpop.f32.mrf.mxu0 }
 0x2f6   : > { %4726 = vst [vmem:[#allocation5_spill] sm:$0xff] %v4253_v44  ;;  %2027 = vmax.xlane.f32.xlu1 %v4253_v44  ;;  %v4261_v1 = vadd.f32 %v4039_v58, %v1873_v50 }
 0x2f7   : > { %v3057_v59 = vpop.f32.mrf.mxu0 }
 0x2f8   : > { %4728 = vst [vmem:[#allocation7_spill] sm:$0xff] %v4261_v1  ;;  %2021 = vmax.xlane.f32.xlu0 %v4257_v53  ;;  %v4265_v18 = vadd.f32 %v3057_v59, %v4039_v58 }
 0x2f9   : > { %v1886_v10 = vpop.f32.mrf.mxu0 }
 0x2fa   : > { %4729 = vst [vmem:[#allocation8_spill] sm:$0xff] %v4265_v18  ;;  %2023 = vmax.xlane.f32.xlu1 %v4261_v1  ;;  %v4273_v44 = vadd.f32 %v4039_v58, %v1886_v10 }
 0x2fb   : > { %v3058_v33 = vpop.f32.mrf.mxu0 }
 0x2fc   : > { %v4269_v3 = vadd.f32 %v3058_v33, %v4039_v58  ;;  %2033 = vmax.xlane.f32.xlu0 %v4265_v18  ;;  %4731 = vst [vmem:[#allocation10_spill] sm:$0xff] %v4273_v44 }
 0x2fd   : > { %v1889_v35 = vpop.f32.mrf.mxu0 }
 0x2fe   : > { %4730 = vst [vmem:[#allocation9_spill] sm:$0xff] %v4269_v3  ;;  %2035 = vmax.xlane.f32.xlu1 %v4269_v3  ;;  %v4277_v53 = vadd.f32 %v4039_v58, %v1889_v35 }
 0x2ff   : > { %v3061_v50 = vpop.f32.mrf.mxu0 }
 0x300   : > { %4732 = vst [vmem:[#allocation11_spill] sm:$0xff] %v4277_v53  ;;  %2029 = vmax.xlane.f32.xlu0 %v4273_v44  ;;  %v4281_v1 = vadd.f32 %v3061_v50, %v4039_v58 }
 0x301   : > { %v1902_v59 = vpop.f32.mrf.mxu0 }
 0x302   : > { %4733 = vst [vmem:[#allocation12_spill] sm:$0xff] %v4281_v1  ;;  %2031 = vmax.xlane.f32.xlu1 %v4277_v53  ;;  %v4289_v3 = vadd.f32 %v4039_v58, %v1902_v59 }
 0x303   : > { %v3062_v33 = vpop.f32.mrf.mxu0 }
 0x304   : > { %v4285_v18 = vadd.f32 %v3062_v33, %v4039_v58  ;;  %2041 = vmax.xlane.f32.xlu0 %v4281_v1  ;;  %4735 = vst [vmem:[#allocation14_spill] sm:$0xff] %v4289_v3 }
 0x305   : > { %v1905_v10 = vpop.f32.mrf.mxu0 }
 0x306   : > { %4734 = vst [vmem:[#allocation13_spill] sm:$0xff] %v4285_v18  ;;  %2043 = vmax.xlane.f32.xlu1 %v4285_v18  ;;  %v4293_v35 = vadd.f32 %v4039_v58, %v1905_v10 }
 0x308   : > { %4736 = vst [vmem:[#allocation15_spill] sm:$0xff] %v4293_v35  ;;  %2037 = vmax.xlane.f32.xlu0 %v4289_v3 }
 0x30a   : > { %2039 = vmax.xlane.f32.xlu1 %v4293_v35 }
 0x313   : > { %v1922_v50 = vpop.xlane.xlu1 %1921 }
 0x314   : > { %v2047_v53 = vsub.f32 %v4042_v11, %v1922_v50 }
 0x315   : > { %v1918_v33 = vpop.xlane.xlu0 %1917 }
 0x316   : > { %v2113_v44 = vmul.f32 1.442695, %v2047_v53  ;;  %v2045_v1 = vsub.f32 %v4045_v61, %v1918_v33 }
 0x317   : > { %v1924_v38 = vpop.xlane.xlu1 %1923 }
 0x318   : > { %3366 = vpow2.f32 %v2113_v44  ;;  %v2109_v59 = vmul.f32 1.442695, %v2045_v1  ;;  %v2048_v30 = vsub.f32 %v4049_v62, %v1924_v38 }
 0x319   : > { %v1920_v18 = vpop.xlane.xlu0 %1919 }
 0x31a   : > { %v2115_v20 = vmul.f32 1.442695, %v2048_v30  ;;  %v2046_v58 = vsub.f32 %v4053_v0, %v1920_v18  ;;  %3368 = vpow2.f32 %v2109_v59 }
 0x31c   : > { %3370 = vpow2.f32 %v2115_v20  ;;  %v2111_v10 = vmul.f32 1.442695, %v2046_v58 }
 0x31d   : > { %v1930_v35 = vpop.xlane.xlu0 %1929 }
 0x31e   : > { %v2051_v3 = vsub.f32 %v4058_v9, %v1930_v35  ;;  %3372 = vpow2.f32 %v2111_v10 }
 0x31f   : > { %v1932_v11 = vpop.xlane.xlu1 %1931 }
 0x320   : > { %v2121_v53 = vmul.f32 1.442695, %v2051_v3  ;;  %v2052_v61 = vsub.f32 %v4061_v6, %v1932_v11 }
 0x321   : > { %v1926_v50 = vpop.xlane.xlu0 %1925 }
 0x322   : > { %3374 = vpow2.f32 %v2121_v53  ;;  %v2123_v44 = vmul.f32 1.442695, %v2052_v61  ;;  %v2049_v62 = vsub.f32 %v4065_v29, %v1926_v50 }
 0x323   : > { %v1928_v38 = vpop.xlane.xlu1 %1927 }
 0x324   : > { %3376 = vpow2.f32 %v2123_v44  ;;  %v2117_v30 = vmul.f32 1.442695, %v2049_v62  ;;  %v2050_v0 = vsub.f32 %v4069_v40, %v1928_v38 }
 0x325   : > { %v4305_v20 = vpop.eup %3366  ;;  %v1938_v1 = vpop.xlane.xlu0 %1937 }
 0x326   : > { %3378 = vpow2.f32 %v2117_v30  ;;  %v2119_v9 = vmul.f32 1.442695, %v2050_v0  ;;  %v2055_v18 = vsub.f32 %v4073_v15, %v1938_v1  ;;  %2241 = vadd.xlane.f32.xlu0 %v4305_v20 }
 0x327   : > { %v1940_v6 = vpop.xlane.xlu1 %1939  ;;  %v4309_v3 = vpop.eup %3368 }
 0x328   : > { %3380 = vpow2.f32 %v2119_v9  ;;  %v2129_v35 = vmul.f32 1.442695, %v2055_v18  ;;  %v2056_v29 = vsub.f32 %v4077_v14, %v1940_v6 }
 0x329   : > { %v4312_v33 = vpop.eup %3370  ;;  %v1934_v59 = vpop.xlane.xlu0 %1933 }
 0x32a   : > { %3382 = vpow2.f32 %v2129_v35  ;;  %v2131_v40 = vmul.f32 1.442695, %v2056_v29  ;;  %v2053_v58 = vsub.f32 %v4081_v17, %v1934_v59  ;;  %2243 = vadd.xlane.f32.xlu1 %v4312_v33  ;;  %2237 = vadd.xlane.f32.xlu0 %v4309_v3 }
 0x32b   : > { %v1936_v15 = vpop.xlane.xlu1 %1935  ;;  %v4318_v53 = vpop.eup %3372 }
 0x32c   : > { %3384 = vpow2.f32 %v2131_v40  ;;  %v2125_v10 = vmul.f32 1.442695, %v2053_v58  ;;  %v2054_v11 = vsub.f32 %v4085_v27, %v1936_v15 }
 0x32d   : > { %v1946_v61 = vpop.xlane.xlu0 %1945 }
 0x32e   : > { %3386 = vpow2.f32 %v2125_v10  ;;  %v2127_v14 = vmul.f32 1.442695, %v2054_v11  ;;  %v2059_v50 = vsub.f32 %v4089_v19, %v1946_v61  ;;  %2239 = vadd.xlane.f32.xlu1 %v4318_v53 }
 0x32f   : > { %v4322_v44 = vpop.eup %3374  ;;  %v1948_v17 = vpop.xlane.xlu1 %1947 }
 0x330   : > { %3388 = vpow2.f32 %v2127_v14  ;;  %v2137_v62 = vmul.f32 1.442695, %v2059_v50  ;;  %v2060_v38 = vsub.f32 %v4093_v48, %v1948_v17  ;;  %2249 = vadd.xlane.f32.xlu0 %v4322_v44 }
 0x331   : > { %v4326_v30 = vpop.eup %3376  ;;  %v1942_v27 = vpop.xlane.xlu0 %1941 }
 0x332   : > { %3390 = vpow2.f32 %v2137_v62  ;;  %v2139_v0 = vmul.f32 1.442695, %v2060_v38  ;;  %v2057_v1 = vsub.f32 %v4097_v2, %v1942_v27  ;;  %2251 = vadd.xlane.f32.xlu1 %v4326_v30 }
 0x333   : > { %v4330_v19 = vpop.eup %3378  ;;  %v1944_v9 = vpop.xlane.xlu1 %1943 }
 0x334   : > { %3392 = vpow2.f32 %v2139_v0  ;;  %v2133_v18 = vmul.f32 1.442695, %v2057_v1  ;;  %v2058_v6 = vsub.f32 %v4101_v25, %v1944_v9  ;;  %2245 = vadd.xlane.f32.xlu0 %v4330_v19 }
 0x335   : > { %v4334_v48 = vpop.eup %3380  ;;  %v1954_v35 = vpop.xlane.xlu0 %1953 }
 0x336   : > { %3394 = vpow2.f32 %v2133_v18  ;;  %v2135_v29 = vmul.f32 1.442695, %v2058_v6  ;;  %v2063_v59 = vsub.f32 %v4105_v28, %v1954_v35  ;;  %2247 = vadd.xlane.f32.xlu1 %v4334_v48 }
 0x337   : > { %v4338_v2 = vpop.eup %3382  ;;  %v1956_v40 = vpop.xlane.xlu1 %1955 }
 0x338   : > { %3396 = vpow2.f32 %v2135_v29  ;;  %v2145_v58 = vmul.f32 1.442695, %v2063_v59  ;;  %v2064_v15 = vsub.f32 %v4109_v31, %v1956_v40  ;;  %2257 = vadd.xlane.f32.xlu0 %v4338_v2 }
 0x339   : > { %v4342_v25 = vpop.eup %3384  ;;  %v1950_v10 = vpop.xlane.xlu0 %1949 }
 0x33a   : > { %3398 = vpow2.f32 %v2145_v58  ;;  %v2147_v11 = vmul.f32 1.442695, %v2064_v15  ;;  %v2061_v61 = vsub.f32 %v4113_v34, %v1950_v10  ;;  %2259 = vadd.xlane.f32.xlu1 %v4342_v25 }
 0x33b   : > { %v4346_v28 = vpop.eup %3386  ;;  %v1952_v14 = vpop.xlane.xlu1 %1951 }
 0x33c   : > { %3400 = vpow2.f32 %v2147_v11  ;;  %v2141_v50 = vmul.f32 1.442695, %v2061_v61  ;;  %v2062_v17 = vsub.f32 %v4117_v23, %v1952_v14  ;;  %2253 = vadd.xlane.f32.xlu0 %v4346_v28 }
 0x33d   : > { %v4350_v31 = vpop.eup %3388  ;;  %v1962_v62 = vpop.xlane.xlu0 %1961 }
 0x33e   : > { %3402 = vpow2.f32 %v2141_v50  ;;  %v2143_v38 = vmul.f32 1.442695, %v2062_v17  ;;  %v2067_v27 = vsub.f32 %v4121_v55, %v1962_v62  ;;  %2255 = vadd.xlane.f32.xlu1 %v4350_v31 }
 0x33f   : > { %v4354_v34 = vpop.eup %3390  ;;  %v1964_v0 = vpop.xlane.xlu1 %1963 }
 0x340   : > { %3404 = vpow2.f32 %v2143_v38  ;;  %v2153_v1 = vmul.f32 1.442695, %v2067_v27  ;;  %v2068_v9 = vsub.f32 %v4125_v52, %v1964_v0  ;;  %2265 = vadd.xlane.f32.xlu0 %v4354_v34 }
 0x341   : > { %v4358_v23 = vpop.eup %3392  ;;  %v1958_v18 = vpop.xlane.xlu0 %1957 }
 0x342   : > { %3406 = vpow2.f32 %v2153_v1  ;;  %v2155_v6 = vmul.f32 1.442695, %v2068_v9  ;;  %v2065_v35 = vsub.f32 %v4129_v41, %v1958_v18  ;;  %2267 = vadd.xlane.f32.xlu1 %v4358_v23 }
 0x343   : > { %v4362_v55 = vpop.eup %3394  ;;  %v1960_v29 = vpop.xlane.xlu1 %1959 }
 0x344   : > { %3408 = vpow2.f32 %v2155_v6  ;;  %v2149_v59 = vmul.f32 1.442695, %v2065_v35  ;;  %v2066_v40 = vsub.f32 %v4133_v42, %v1960_v29  ;;  %2261 = vadd.xlane.f32.xlu0 %v4362_v55 }
 0x345   : > { %v4366_v52 = vpop.eup %3396  ;;  %v1970_v58 = vpop.xlane.xlu0 %1969 }
 0x346   : > { %3410 = vpow2.f32 %v2149_v59  ;;  %v2151_v15 = vmul.f32 1.442695, %v2066_v40  ;;  %v2071_v10 = vsub.f32 %v4137_v43, %v1970_v58  ;;  %2263 = vadd.xlane.f32.xlu1 %v4366_v52 }
 0x347   : > { %v4370_v41 = vpop.eup %3398  ;;  %v1972_v11 = vpop.xlane.xlu1 %1971 }
 0x348   : > { %3412 = vpow2.f32 %v2151_v15  ;;  %v2161_v61 = vmul.f32 1.442695, %v2071_v10  ;;  %v2072_v14 = vsub.f32 %v4141_v45, %v1972_v11  ;;  %2273 = vadd.xlane.f32.xlu0 %v4370_v41 }
 0x349   : > { %v4374_v42 = vpop.eup %3400  ;;  %v1966_v50 = vpop.xlane.xlu0 %1965 }
 0x34a   : > { %3414 = vpow2.f32 %v2161_v61  ;;  %v2163_v17 = vmul.f32 1.442695, %v2072_v14  ;;  %v2069_v62 = vsub.f32 %v4145_v49, %v1966_v50  ;;  %2275 = vadd.xlane.f32.xlu1 %v4374_v42 }
 0x34b   : > { %v4378_v43 = vpop.eup %3402  ;;  %v1968_v38 = vpop.xlane.xlu1 %1967 }
 0x34c   : > { %3416 = vpow2.f32 %v2163_v17  ;;  %v2157_v27 = vmul.f32 1.442695, %v2069_v62  ;;  %v2070_v0 = vsub.f32 %v4149_v32, %v1968_v38  ;;  %2269 = vadd.xlane.f32.xlu0 %v4378_v43 }
 0x34d   : > { %v4382_v45 = vpop.eup %3404  ;;  %v1978_v1 = vpop.xlane.xlu0 %1977 }
 0x34e   : > { %3418 = vpow2.f32 %v2157_v27  ;;  %v2159_v9 = vmul.f32 1.442695, %v2070_v0  ;;  %v2075_v18 = vsub.f32 %v4153_v54, %v1978_v1  ;;  %2271 = vadd.xlane.f32.xlu1 %v4382_v45 }
 0x34f   : > { %v4386_v49 = vpop.eup %3406  ;;  %v1980_v6 = vpop.xlane.xlu1 %1979 }
 0x350   : > { %3420 = vpow2.f32 %v2159_v9  ;;  %v2169_v35 = vmul.f32 1.442695, %v2075_v18  ;;  %v2076_v29 = vsub.f32 %v4157_v56, %v1980_v6  ;;  %2281 = vadd.xlane.f32.xlu0 %v4386_v49 }
 0x351   : > { %v4390_v32 = vpop.eup %3408  ;;  %v1974_v59 = vpop.xlane.xlu0 %1973 }
 0x352   : > { %3422 = vpow2.f32 %v2169_v35  ;;  %v2171_v40 = vmul.f32 1.442695, %v2076_v29  ;;  %v2073_v58 = vsub.f32 %v4161_v51, %v1974_v59  ;;  %2283 = vadd.xlane.f32.xlu1 %v4390_v32 }
 0x353   : > { %v4394_v54 = vpop.eup %3410  ;;  %v1976_v15 = vpop.xlane.xlu1 %1975 }
 0x354   : > { %3424 = vpow2.f32 %v2171_v40  ;;  %v2165_v10 = vmul.f32 1.442695, %v2073_v58  ;;  %v2074_v11 = vsub.f32 %v4165_v21, %v1976_v15  ;;  %2277 = vadd.xlane.f32.xlu0 %v4394_v54 }
 0x355   : > { %v4398_v56 = vpop.eup %3412  ;;  %v1986_v61 = vpop.xlane.xlu0 %1985 }
 0x356   : > { %3426 = vpow2.f32 %v2165_v10  ;;  %v2167_v14 = vmul.f32 1.442695, %v2074_v11  ;;  %v2079_v50 = vsub.f32 %v4169_v63, %v1986_v61  ;;  %2279 = vadd.xlane.f32.xlu1 %v4398_v56 }
 0x357   : > { %v4402_v51 = vpop.eup %3414  ;;  %v1988_v17 = vpop.xlane.xlu1 %1987 }
 0x358   : > { %3428 = vpow2.f32 %v2167_v14  ;;  %v2177_v62 = vmul.f32 1.442695, %v2079_v50  ;;  %v2080_v38 = vsub.f32 %v4173_v4, %v1988_v17  ;;  %2289 = vadd.xlane.f32.xlu0 %v4402_v51 }
 0x359   : > { %v4406_v21 = vpop.eup %3416  ;;  %v1982_v27 = vpop.xlane.xlu0 %1981 }
 0x35a   : > { %3430 = vpow2.f32 %v2177_v62  ;;  %v2179_v0 = vmul.f32 1.442695, %v2080_v38  ;;  %v2077_v1 = vsub.f32 %v4177_v7, %v1982_v27  ;;  %2291 = vadd.xlane.f32.xlu1 %v4406_v21 }
 0x35b   : > { %v4410_v63 = vpop.eup %3418  ;;  %v1984_v9 = vpop.xlane.xlu1 %1983 }
 0x35c   : > { %3432 = vpow2.f32 %v2179_v0  ;;  %v2173_v18 = vmul.f32 1.442695, %v2077_v1  ;;  %v2078_v6 = vsub.f32 %v4181_v12, %v1984_v9  ;;  %2285 = vadd.xlane.f32.xlu0 %v4410_v63 }
 0x35d   : > { %v4414_v4 = vpop.eup %3420  ;;  %v1994_v35 = vpop.xlane.xlu0 %1993 }
 0x35e   : > { %3434 = vpow2.f32 %v2173_v18  ;;  %v2175_v29 = vmul.f32 1.442695, %v2078_v6  ;;  %v2083_v59 = vsub.f32 %v4185_v16, %v1994_v35  ;;  %2287 = vadd.xlane.f32.xlu1 %v4414_v4 }
 0x35f   : > { %v4418_v7 = vpop.eup %3422  ;;  %v1996_v40 = vpop.xlane.xlu1 %1995 }
 0x360   : > { %3436 = vpow2.f32 %v2175_v29  ;;  %v2185_v58 = vmul.f32 1.442695, %v2083_v59  ;;  %v2084_v15 = vsub.f32 %v4189_v36, %v1996_v40  ;;  %2297 = vadd.xlane.f32.xlu0 %v4418_v7 }
 0x361   : > { %v4422_v12 = vpop.eup %3424  ;;  %v1990_v10 = vpop.xlane.xlu0 %1989 }
 0x362   : > { %3438 = vpow2.f32 %v2185_v58  ;;  %v2187_v11 = vmul.f32 1.442695, %v2084_v15  ;;  %v2081_v61 = vsub.f32 %v4193_v24, %v1990_v10  ;;  %2299 = vadd.xlane.f32.xlu1 %v4422_v12 }
 0x363   : > { %v4426_v16 = vpop.eup %3426  ;;  %v1992_v14 = vpop.xlane.xlu1 %1991 }
 0x364   : > { %3440 = vpow2.f32 %v2187_v11  ;;  %v2181_v50 = vmul.f32 1.442695, %v2081_v61  ;;  %v2082_v17 = vsub.f32 %v4197_v26, %v1992_v14  ;;  %2293 = vadd.xlane.f32.xlu0 %v4426_v16 }
 0x365   : > { %v4430_v36 = vpop.eup %3428  ;;  %v2002_v62 = vpop.xlane.xlu0 %2001 }
 0x366   : > { %3442 = vpow2.f32 %v2181_v50  ;;  %v2183_v38 = vmul.f32 1.442695, %v2082_v17  ;;  %v2087_v27 = vsub.f32 %v4201_v46, %v2002_v62  ;;  %2295 = vadd.xlane.f32.xlu1 %v4430_v36 }
 0x367   : > { %v4434_v24 = vpop.eup %3430  ;;  %v2004_v0 = vpop.xlane.xlu1 %2003 }
 0x368   : > { %3444 = vpow2.f32 %v2183_v38  ;;  %v2193_v1 = vmul.f32 1.442695, %v2087_v27  ;;  %v2088_v9 = vsub.f32 %v4205_v37, %v2004_v0  ;;  %2305 = vadd.xlane.f32.xlu0 %v4434_v24 }
 0x369   : > { %v4438_v26 = vpop.eup %3432  ;;  %v1998_v18 = vpop.xlane.xlu0 %1997 }
 0x36a   : > { %3446 = vpow2.f32 %v2193_v1  ;;  %v2195_v6 = vmul.f32 1.442695, %v2088_v9  ;;  %v2085_v35 = vsub.f32 %v4209_v39, %v1998_v18  ;;  %2307 = vadd.xlane.f32.xlu1 %v4438_v26 }
 0x36b   : > { %v4442_v46 = vpop.eup %3434  ;;  %v2000_v29 = vpop.xlane.xlu1 %1999 }
 0x36c   : > { %3448 = vpow2.f32 %v2195_v6  ;;  %v2189_v59 = vmul.f32 1.442695, %v2085_v35  ;;  %v2086_v40 = vsub.f32 %v4213_v8, %v2000_v29  ;;  %2301 = vadd.xlane.f32.xlu0 %v4442_v46 }
 0x36d   : > { %v4446_v37 = vpop.eup %3436  ;;  %v2010_v58 = vpop.xlane.xlu0 %2009 }
 0x36e   : > { %3450 = vpow2.f32 %v2189_v59  ;;  %v2191_v15 = vmul.f32 1.442695, %v2086_v40  ;;  %v2091_v10 = vsub.f32 %v4217_v47, %v2010_v58  ;;  %2303 = vadd.xlane.f32.xlu1 %v4446_v37  ;;  %v4737_v58 = vld [vmem:[#allocation2_spill] sm:$0xff] }
 0x36f   : > { %v4450_v39 = vpop.eup %3438  ;;  %v2012_v11 = vpop.xlane.xlu1 %2011 }
 0x370   : > { %3452 = vpow2.f32 %v2191_v15  ;;  %v2201_v61 = vmul.f32 1.442695, %v2091_v10  ;;  %v2092_v14 = vsub.f32 %v4221_v22, %v2012_v11  ;;  %2313 = vadd.xlane.f32.xlu0 %v4450_v39 }
 0x371   : > { %v4454_v8 = vpop.eup %3440  ;;  %v2006_v50 = vpop.xlane.xlu0 %2005 }
 0x372   : > { %3454 = vpow2.f32 %v2201_v61  ;;  %v2203_v17 = vmul.f32 1.442695, %v2092_v14  ;;  %v2089_v62 = vsub.f32 %v4225_v57, %v2006_v50  ;;  %2315 = vadd.xlane.f32.xlu1 %v4454_v8  ;;  %v4738_v61 = vld [vmem:[#allocation3_spill] sm:$0xff] }
 0x373   : > { %v4458_v47 = vpop.eup %3442  ;;  %v2008_v38 = vpop.xlane.xlu1 %2007 }
 0x374   : > { %3456 = vpow2.f32 %v2203_v17  ;;  %v2197_v27 = vmul.f32 1.442695, %v2089_v62  ;;  %v2090_v0 = vsub.f32 %v4229_v60, %v2008_v38  ;;  %2309 = vadd.xlane.f32.xlu0 %v4458_v47  ;;  %v4739_v62 = vld [vmem:[#allocation4_spill] sm:$0xff] }
 0x375   : > { %v4462_v22 = vpop.eup %3444  ;;  %v2018_v1 = vpop.xlane.xlu0 %2017 }
 0x376   : > { %3458 = vpow2.f32 %v2197_v27  ;;  %v2199_v9 = vmul.f32 1.442695, %v2090_v0  ;;  %v2095_v18 = vsub.f32 %v4233_v5, %v2018_v1  ;;  %2311 = vadd.xlane.f32.xlu1 %v4462_v22 }
 0x377   : > { %v4466_v57 = vpop.eup %3446  ;;  %v2020_v6 = vpop.xlane.xlu1 %2019 }
 0x378   : > { %3460 = vpow2.f32 %v2199_v9  ;;  %v2209_v35 = vmul.f32 1.442695, %v2095_v18  ;;  %v2096_v29 = vsub.f32 %v4237_v13, %v2020_v6  ;;  %2321 = vadd.xlane.f32.xlu0 %v4466_v57  ;;  %v4740_v9 = vld [vmem:[#allocation5_spill] sm:$0xff] }
 0x379   : > { %v4470_v60 = vpop.eup %3448  ;;  %v2014_v59 = vpop.xlane.xlu0 %2013 }
 0x37a   : > { %3462 = vpow2.f32 %v2209_v35  ;;  %v2211_v40 = vmul.f32 1.442695, %v2096_v29  ;;  %v2093_v15 = vsub.f32 %v4737_v58, %v2014_v59  ;;  %2323 = vadd.xlane.f32.xlu1 %v4470_v60  ;;  %v4741_v59 = vld [vmem:[#allocation6_spill] sm:$0xff] }
 0x37b   : > { %v4474_v5 = vpop.eup %3450  ;;  %v2016_v10 = vpop.xlane.xlu1 %2015 }
 0x37c   : > { %3464 = vpow2.f32 %v2211_v40  ;;  %v2205_v11 = vmul.f32 1.442695, %v2093_v15  ;;  %v2094_v14 = vsub.f32 %v4738_v61, %v2016_v10  ;;  %2317 = vadd.xlane.f32.xlu0 %v4474_v5 }
 0x37d   : > { %v4478_v13 = vpop.eup %3452  ;;  %v2026_v50 = vpop.xlane.xlu0 %2025 }
 0x37e   : > { %3466 = vpow2.f32 %v2205_v11  ;;  %v2207_v17 = vmul.f32 1.442695, %v2094_v14  ;;  %v2099_v38 = vsub.f32 %v4739_v62, %v2026_v50  ;;  %2319 = vadd.xlane.f32.xlu1 %v4478_v13  ;;  %v4743_v11 = vld [vmem:[#allocation7_spill] sm:$0xff]  ;;  %v4745_v62 = vld [vmem:[#allocation8_spill] sm:$0xff] }
 0x37f   : > { %v4482_v27 = vpop.eup %3454  ;;  %v2028_v0 = vpop.xlane.xlu1 %2027 }
 0x380   : > { %3468 = vpow2.f32 %v2207_v17  ;;  %v2217_v1 = vmul.f32 1.442695, %v2099_v38  ;;  %v2100_v18 = vsub.f32 %v4740_v9, %v2028_v0  ;;  %2329 = vadd.xlane.f32.xlu0 %v4482_v27 }
 0x381   : > { %v4486_v6 = vpop.eup %3456  ;;  %v2022_v35 = vpop.xlane.xlu0 %2021 }
 0x382   : > { %3470 = vpow2.f32 %v2217_v1  ;;  %v2219_v29 = vmul.f32 1.442695, %v2100_v18  ;;  %v2097_v40 = vsub.f32 %v4741_v59, %v2022_v35  ;;  %2331 = vadd.xlane.f32.xlu1 %v4486_v6  ;;  %v4747_v18 = vld [vmem:[#allocation9_spill] sm:$0xff] }
 0x383   : > { %v4490_v58 = vpop.eup %3458  ;;  %v2024_v15 = vpop.xlane.xlu1 %2023 }
 0x384   : > { %4742 = vst [vmem:[#allocation2_spill] sm:$0xff] %v4490_v58  ;;  %3472 = vpow2.f32 %v2219_v29  ;;  %v2213_v10 = vmul.f32 1.442695, %v2097_v40  ;;  %v2098_v61 = vsub.f32 %v4743_v11, %v2024_v15  ;;  %2325 = vadd.xlane.f32.xlu0 %v4490_v58  ;;  %v4749_v15 = vld [vmem:[#allocation10_spill] sm:$0xff] }
 0x385   : > { %v4494_v14 = vpop.eup %3460  ;;  %v2034_v50 = vpop.xlane.xlu0 %2033 }
 0x386   : > { %4744 = vst [vmem:[#allocation3_spill] sm:$0xff] %v4494_v14  ;;  %3474 = vpow2.f32 %v2213_v10  ;;  %v2215_v17 = vmul.f32 1.442695, %v2098_v61  ;;  %v2103_v38 = vsub.f32 %v4745_v62, %v2034_v50  ;;  %2327 = vadd.xlane.f32.xlu1 %v4494_v14 }
 0x387   : > { %v4498_v0 = vpop.eup %3462  ;;  %v2036_v1 = vpop.xlane.xlu1 %2035 }
 0x388   : > { %4746 = vst [vmem:[#allocation4_spill] sm:$0xff] %v4498_v0  ;;  %3476 = vpow2.f32 %v2215_v17  ;;  %v2225_v9 = vmul.f32 1.442695, %v2103_v38  ;;  %v2104_v35 = vsub.f32 %v4747_v18, %v2036_v1  ;;  %2337 = vadd.xlane.f32.xlu0 %v4498_v0  ;;  %v4751_v17 = vld [vmem:[#allocation11_spill] sm:$0xff] }
 0x389   : > { %v4502_v29 = vpop.eup %3464  ;;  %v2030_v59 = vpop.xlane.xlu0 %2029  ;;  %v4757_v0 = vld [vmem:[#allocation15_spill] sm:$0xff] }
 0x38a   : > { %4748 = vst [vmem:[#allocation5_spill] sm:$0xff] %v4502_v29  ;;  %3478 = vpow2.f32 %v2225_v9  ;;  %v2227_v40 = vmul.f32 1.442695, %v2104_v35  ;;  %v2101_v10 = vsub.f32 %v4749_v15, %v2030_v59  ;;  %2339 = vadd.xlane.f32.xlu1 %v4502_v29  ;;  %v4754_v15 = vld [vmem:[#allocation12_spill] sm:$0xff] }
 0x38b   : > { %v4506_v11 = vpop.eup %3466  ;;  %v2032_v61 = vpop.xlane.xlu1 %2031 }
 0x38c   : > { %4750 = vst [vmem:[#allocation6_spill] sm:$0xff] %v4506_v11  ;;  %3480 = vpow2.f32 %v2227_v40  ;;  %v2221_v50 = vmul.f32 1.442695, %v2101_v10  ;;  %v2102_v62 = vsub.f32 %v4751_v17, %v2032_v61  ;;  %2333 = vadd.xlane.f32.xlu0 %v4506_v11  ;;  %v4755_v61 = vld [vmem:[#allocation14_spill] sm:$0xff] }
 0x38d   : > { %v4510_v38 = vpop.eup %3468  ;;  %v2042_v1 = vpop.xlane.xlu0 %2041 }
 0x38e   : > { %4752 = vst [vmem:[#allocation7_spill] sm:$0xff] %v4510_v38  ;;  %3482 = vpow2.f32 %v2221_v50  ;;  %v2223_v18 = vmul.f32 1.442695, %v2102_v62  ;;  %2335 = vadd.xlane.f32.xlu1 %v4510_v38  ;;  %v2107_v10 = vsub.f32 %v4754_v15, %v2042_v1  ;;  %v4756_v62 = vld [vmem:[#allocation13_spill] sm:$0xff] }
 0x38f   : > { %v4513_v9 = vpop.eup %3470  ;;  %v2044_v35 = vpop.xlane.xlu1 %2043 }
 0x390   : > { %4753 = vst [vmem:[#allocation8_spill] sm:$0xff] %v4513_v9  ;;  %3484 = vpow2.f32 %v2223_v18  ;;  %2345 = vadd.xlane.f32.xlu0 %v4513_v9  ;;  %v2108_v38 = vsub.f32 %v4756_v62, %v2044_v35  ;;  %v2233_v9 = vmul.f32 1.442695, %v2107_v10 }
 0x391   : > { %v4516_v59 = vpop.eup %3472  ;;  %v2038_v40 = vpop.xlane.xlu0 %2037 }
 0x392   : > { %v2105_v17 = vsub.f32 %v4755_v61, %v2038_v40  ;;  %2347 = vadd.xlane.f32.xlu1 %v4516_v59  ;;  %v2235_v40 = vmul.f32 1.442695, %v2108_v38 }
 0x393   : > { %v4521_v11 = vpop.eup %3474  ;;  %v2040_v50 = vpop.xlane.xlu1 %2039 }
 0x394   : > { %v2229_v29 = vmul.f32 1.442695, %v2105_v17  ;;  %v2106_v14 = vsub.f32 %v4757_v0, %v2040_v50  ;;  %2341 = vadd.xlane.f32.xlu0 %v4521_v11 }
 0x395   : > { %v4526_v18 = vpop.eup %3476 }
 0x396   : > { %3486 = vpow2.f32 %v2229_v29  ;;  %v2231_v58 = vmul.f32 1.442695, %v2106_v14  ;;  %2343 = vadd.xlane.f32.xlu1 %v4526_v18 }
 0x397   : > { %v4529_v1 = vpop.eup %3478 }
 0x398   : > { %3488 = vpow2.f32 %v2231_v58  ;;  %2353 = vadd.xlane.f32.xlu0 %v4529_v1 }
 0x399   : > { %v4532_v15 = vpop.eup %3480  ;;  %3490 = vpow2.f32 %v2233_v9 }
 0x39a   : > { %2355 = vadd.xlane.f32.xlu1 %v4532_v15  ;;  %3492 = vpow2.f32 %v2235_v40 }
 0x39b   : > { %v4535_v0 = vpop.eup %3482 }
 0x39c   : > { %2349 = vadd.xlane.f32.xlu0 %v4535_v0 }
 0x39d   : > { %v4538_v29 = vpop.eup %3484 }
 0x39e   : > { %2351 = vadd.xlane.f32.xlu1 %v4538_v29 }
 0x3a3   : > { %v4541_v14 = vpop.eup %3486 }
 0x3a4   : > { %4758 = vst [vmem:[#allocation9_spill] sm:$0xff] %v4541_v14  ;;  %2357 = vadd.xlane.f32.xlu0 %v4541_v14 }
 0x3a5   : > { %v4544_v58 = vpop.eup %3488 }
 0x3a6   : > { %4759 = vst [vmem:[#allocation10_spill] sm:$0xff] %v4544_v58  ;;  %2359 = vadd.xlane.f32.xlu1 %v4544_v58  ;;  %v4547_v38 = vpop.eup %3490 }
 0x3a7   : > { %4760 = vst [vmem:[#allocation11_spill] sm:$0xff] %v4547_v38  ;;  %v4550_v9 = vpop.eup %3492 }
 0x3a8   : > { %2361 = vadd.xlane.f32.xlu0 %v4547_v38  ;;  %4761 = vst [vmem:[#allocation12_spill] sm:$0xff] %v4550_v9 }
 0x3aa   : > { %2363 = vadd.xlane.f32.xlu1 %v4550_v9 }
 0x3af   : > { %v2242_v35 = vpop.xlane.xlu0 %2241 }
 0x3b0   : > { %3494 = vrcp.f32 %v2242_v35 }
 0x3b3   : > { %v2244_v10 = vpop.xlane.xlu1 %2243  ;;  %v2238_v61 = vpop.xlane.xlu0 %2237 }
 0x3b4   : > { %3496 = vrcp.f32 %v2244_v10 }
 0x3b5   : > { %3498 = vrcp.f32 %v2238_v61 }
 0x3b7   : > { %v2240_v17 = vpop.xlane.xlu1 %2239 }
 0x3b8   : > { %3500 = vrcp.f32 %v2240_v17 }
 0x3b9   : > { %v2250_v50 = vpop.xlane.xlu0 %2249 }
 0x3ba   : > { %3502 = vrcp.f32 %v2250_v50 }
 0x3bb   : > { %v2252_v62 = vpop.xlane.xlu1 %2251 }
 0x3bc   : > { %3504 = vrcp.f32 %v2252_v62 }
 0x3bd   : > { %v3495_v40 = vpop.eup %3494  ;;  %v2246_v35 = vpop.xlane.xlu0 %2245 }
 0x3be   : > { %v2431_v10 = vmul.f32 %v3495_v40, %v4305_v20  ;;  %3506 = vrcp.f32 %v2246_v35 }
 0x3bf   : > { %v2248_v61 = vpop.xlane.xlu1 %2247 }
 0x3c0   : > { %2495 = vst [vmem:[%s4557_s29 + $0x10] sm:$0xff] %v2431_v10  ;;  %3508 = vrcp.f32 %v2248_v61 }
 0x3c1   : > { %v3497_v17 = vpop.eup %3496  ;;  %v2258_v50 = vpop.xlane.xlu0 %2257 }
 0x3c2   : > { %v3499_v62 = vpop.eup %3498  ;;  %v2432_v9 = vmul.f32 %v3497_v17, %v4312_v33  ;;  %3510 = vrcp.f32 %v2258_v50 }
 0x3c3   : > { %v2429_v38 = vmul.f32 %v3499_v62, %v4309_v3  ;;  %v2260_v58 = vpop.xlane.xlu1 %2259 }
 0x3c4   : > { %2496 = vst [vmem:[%s4557_s29 + $0x18] sm:$0xff] %v2432_v9  ;;  %3512 = vrcp.f32 %v2260_v58 }
 0x3c5   : > { %v3501_v14 = vpop.eup %3500  ;;  %2493 = vst [vmem:[%s4557_s29] sm:$0xff] %v2429_v38  ;;  %v2254_v20 = vpop.xlane.xlu0 %2253 }
 0x3c6   : > { %v2430_v40 = vmul.f32 %v3501_v14, %v4318_v53  ;;  %3514 = vrcp.f32 %v2254_v20 }
 0x3c7   : > { %v3503_v35 = vpop.eup %3502  ;;  %v2256_v10 = vpop.xlane.xlu1 %2255 }
 0x3c8   : > { %2494 = vst [vmem:[%s4557_s29 + $0x8] sm:$0xff] %v2430_v40  ;;  %v2435_v33 = vmul.f32 %v3503_v35, %v4322_v44  ;;  %3516 = vrcp.f32 %v2256_v10 }
 0x3c9   : > { %v3505_v61 = vpop.eup %3504  ;;  %v2266_v3 = vpop.xlane.xlu0 %2265 }
 0x3ca   : > { %2499 = vst [vmem:[%s4557_s29 + $0x30] sm:$0xff] %v2435_v33  ;;  %v2436_v58 = vmul.f32 %v3505_v61, %v4326_v30  ;;  %3518 = vrcp.f32 %v2266_v3 }
 0x3cb   : > { %v3507_v38 = vpop.eup %3506  ;;  %v2268_v9 = vpop.xlane.xlu1 %2267 }
 0x3cc   : > { %2500 = vst [vmem:[%s4557_s29 + $0x38] sm:$0xff] %v2436_v58  ;;  %v2433_v53 = vmul.f32 %v3507_v38, %v4330_v19  ;;  %3520 = vrcp.f32 %v2268_v9 }
 0x3cd   : > { %v3509_v14 = vpop.eup %3508  ;;  %v2262_v17 = vpop.xlane.xlu0 %2261 }
 0x3ce   : > { %2497 = vst [vmem:[%s4557_s29 + $0x20] sm:$0xff] %v2433_v53  ;;  %v2434_v44 = vmul.f32 %v3509_v14, %v4334_v48  ;;  %3522 = vrcp.f32 %v2262_v17 }
 0x3cf   : > { %v3511_v50 = vpop.eup %3510  ;;  %v2264_v62 = vpop.xlane.xlu1 %2263 }
 0x3d0   : > { %2498 = vst [vmem:[%s4557_s29 + $0x28] sm:$0xff] %v2434_v44  ;;  %v2439_v30 = vmul.f32 %v3511_v50, %v4338_v2  ;;  %3524 = vrcp.f32 %v2264_v62 }
 0x3d1   : > { %v3513_v20 = vpop.eup %3512  ;;  %v2274_v40 = vpop.xlane.xlu0 %2273 }
 0x3d2   : > { %2503 = vst [vmem:[%s4557_s29 + $0x50] sm:$0xff] %v2439_v30  ;;  %v2440_v19 = vmul.f32 %v3513_v20, %v4342_v25  ;;  %3526 = vrcp.f32 %v2274_v40 }
 0x3d3   : > { %v3515_v35 = vpop.eup %3514  ;;  %v2276_v10 = vpop.xlane.xlu1 %2275 }
 0x3d4   : > { %2504 = vst [vmem:[%s4557_s29 + $0x58] sm:$0xff] %v2440_v19  ;;  %v2437_v48 = vmul.f32 %v3515_v35, %v4346_v28  ;;  %3528 = vrcp.f32 %v2276_v10 }
 0x3d5   : > { %v3517_v33 = vpop.eup %3516  ;;  %v2270_v61 = vpop.xlane.xlu0 %2269 }
 0x3d6   : > { %2501 = vst [vmem:[%s4557_s29 + $0x40] sm:$0xff] %v2437_v48  ;;  %v2438_v2 = vmul.f32 %v3517_v33, %v4350_v31  ;;  %3530 = vrcp.f32 %v2270_v61 }
 0x3d7   : > { %v3519_v3 = vpop.eup %3518  ;;  %v2272_v58 = vpop.xlane.xlu1 %2271 }
 0x3d8   : > { %2502 = vst [vmem:[%s4557_s29 + $0x48] sm:$0xff] %v2438_v2  ;;  %v2443_v25 = vmul.f32 %v3519_v3, %v4354_v34  ;;  %3532 = vrcp.f32 %v2272_v58 }
 0x3d9   : > { %v3521_v38 = vpop.eup %3520  ;;  %v2282_v9 = vpop.xlane.xlu0 %2281 }
 0x3da   : > { %2507 = vst [vmem:[%s4557_s29 + $0x70] sm:$0xff] %v2443_v25  ;;  %v2444_v28 = vmul.f32 %v3521_v38, %v4358_v23  ;;  %3534 = vrcp.f32 %v2282_v9 }
 0x3db   : > { %v3523_v53 = vpop.eup %3522  ;;  %v2284_v14 = vpop.xlane.xlu1 %2283 }
 0x3dc   : > { %2508 = vst [vmem:[%s4557_s29 + $0x78] sm:$0xff] %v2444_v28  ;;  %v2441_v31 = vmul.f32 %v3523_v53, %v4362_v55  ;;  %3536 = vrcp.f32 %v2284_v14 }
 0x3dd   : > { %v3525_v17 = vpop.eup %3524  ;;  %v2278_v44 = vpop.xlane.xlu0 %2277 }
 0x3de   : > { %2505 = vst [vmem:[%s4557_s29 + $0x60] sm:$0xff] %v2441_v31  ;;  %v2442_v34 = vmul.f32 %v3525_v17, %v4366_v52  ;;  %3538 = vrcp.f32 %v2278_v44 }
 0x3df   : > { %v3527_v50 = vpop.eup %3526  ;;  %v2280_v62 = vpop.xlane.xlu1 %2279 }
 0x3e0   : > { %2506 = vst [vmem:[%s4557_s29 + $0x68] sm:$0xff] %v2442_v34  ;;  %v2447_v23 = vmul.f32 %v3527_v50, %v4370_v41  ;;  %3540 = vrcp.f32 %v2280_v62 }
 0x3e1   : > { %v3529_v30 = vpop.eup %3528  ;;  %v2290_v20 = vpop.xlane.xlu0 %2289 }
 0x3e2   : > { %2511 = vst [vmem:[%s4557_s29 + $0x90] sm:$0xff] %v2447_v23  ;;  %v2448_v55 = vmul.f32 %v3529_v30, %v4374_v42  ;;  %3542 = vrcp.f32 %v2290_v20 }
 0x3e3   : > { %v3531_v40 = vpop.eup %3530  ;;  %v2292_v19 = vpop.xlane.xlu1 %2291 }
 0x3e4   : > { %2512 = vst [vmem:[%s4557_s29 + $0x98] sm:$0xff] %v2448_v55  ;;  %v2445_v52 = vmul.f32 %v3531_v40, %v4378_v43  ;;  %3544 = vrcp.f32 %v2292_v19 }
 0x3e5   : > { %v3533_v35 = vpop.eup %3532  ;;  %v2286_v10 = vpop.xlane.xlu0 %2285 }
 0x3e6   : > { %2509 = vst [vmem:[%s4557_s29 + $0x80] sm:$0xff] %v2445_v52  ;;  %v2446_v41 = vmul.f32 %v3533_v35, %v4382_v45  ;;  %3546 = vrcp.f32 %v2286_v10 }
 0x3e7   : > { %v3535_v48 = vpop.eup %3534  ;;  %v2288_v33 = vpop.xlane.xlu1 %2287 }
 0x3e8   : > { %2510 = vst [vmem:[%s4557_s29 + $0x88] sm:$0xff] %v2446_v41  ;;  %v2451_v42 = vmul.f32 %v3535_v48, %v4386_v49  ;;  %3548 = vrcp.f32 %v2288_v33 }
 0x3e9   : > { %v3537_v61 = vpop.eup %3536  ;;  %v2298_v2 = vpop.xlane.xlu0 %2297 }
 0x3ea   : > { %2515 = vst [vmem:[%s4557_s29 + $0xb0] sm:$0xff] %v2451_v42  ;;  %v2452_v43 = vmul.f32 %v3537_v61, %v4390_v32  ;;  %3550 = vrcp.f32 %v2298_v2 }
 0x3eb   : > { %v3539_v3 = vpop.eup %3538  ;;  %v2300_v58 = vpop.xlane.xlu1 %2299 }
 0x3ec   : > { %2516 = vst [vmem:[%s4557_s29 + $0xb8] sm:$0xff] %v2452_v43  ;;  %v2449_v45 = vmul.f32 %v3539_v3, %v4394_v54  ;;  %3552 = vrcp.f32 %v2300_v58 }
 0x3ed   : > { %v3541_v25 = vpop.eup %3540  ;;  %v2294_v38 = vpop.xlane.xlu0 %2293 }
 0x3ee   : > { %2513 = vst [vmem:[%s4557_s29 + $0xa0] sm:$0xff] %v2449_v45  ;;  %v2450_v49 = vmul.f32 %v3541_v25, %v4398_v56  ;;  %3554 = vrcp.f32 %v2294_v38 }
 0x3ef   : > { %v3543_v9 = vpop.eup %3542  ;;  %v2296_v28 = vpop.xlane.xlu1 %2295 }
 0x3f0   : > { %2514 = vst [vmem:[%s4557_s29 + $0xa8] sm:$0xff] %v2450_v49  ;;  %v2455_v32 = vmul.f32 %v3543_v9, %v4402_v51  ;;  %3556 = vrcp.f32 %v2296_v28 }
 0x3f1   : > { %v3545_v53 = vpop.eup %3544  ;;  %v2306_v14 = vpop.xlane.xlu0 %2305 }
 0x3f2   : > { %2519 = vst [vmem:[%s4557_s29 + $0xd0] sm:$0xff] %v2455_v32  ;;  %v2456_v54 = vmul.f32 %v3545_v53, %v4406_v21  ;;  %3558 = vrcp.f32 %v2306_v14 }
 0x3f3   : > { %v3547_v31 = vpop.eup %3546  ;;  %v2308_v17 = vpop.xlane.xlu1 %2307 }
 0x3f4   : > { %2520 = vst [vmem:[%s4557_s29 + $0xd8] sm:$0xff] %v2456_v54  ;;  %v2453_v56 = vmul.f32 %v3547_v31, %v4410_v63  ;;  %3560 = vrcp.f32 %v2308_v17 }
 0x3f5   : > { %v3549_v44 = vpop.eup %3548  ;;  %v2302_v34 = vpop.xlane.xlu0 %2301 }
 0x3f6   : > { %2517 = vst [vmem:[%s4557_s29 + $0xc0] sm:$0xff] %v2453_v56  ;;  %v2454_v51 = vmul.f32 %v3549_v44, %v4414_v4  ;;  %3562 = vrcp.f32 %v2302_v34 }
 0x3f7   : > { %v3551_v50 = vpop.eup %3550  ;;  %v2304_v62 = vpop.xlane.xlu1 %2303 }
 0x3f8   : > { %2518 = vst [vmem:[%s4557_s29 + $0xc8] sm:$0xff] %v2454_v51  ;;  %v2459_v21 = vmul.f32 %v3551_v50, %v4418_v7  ;;  %3564 = vrcp.f32 %v2304_v62 }
 0x3f9   : > { %v3553_v23 = vpop.eup %3552  ;;  %v2314_v30 = vpop.xlane.xlu0 %2313 }
 0x3fa   : > { %2523 = vst [vmem:[%s4557_s29 + $0xf0] sm:$0xff] %v2459_v21  ;;  %v2460_v63 = vmul.f32 %v3553_v23, %v4422_v12  ;;  %3566 = vrcp.f32 %v2314_v30 }
 0x3fb   : > { %v3555_v20 = vpop.eup %3554  ;;  %v2316_v55 = vpop.xlane.xlu1 %2315 }
 0x3fc   : > { %2524 = vst [vmem:[%s4557_s29 + $0xf8] sm:$0xff] %v2460_v63  ;;  %v2457_v4 = vmul.f32 %v3555_v20, %v4426_v16  ;;  %3568 = vrcp.f32 %v2316_v55 }
 0x3fd   : > { %v3557_v40 = vpop.eup %3556  ;;  %v2310_v19 = vpop.xlane.xlu0 %2309 }
 0x3fe   : > { %2521 = vst [vmem:[%s4557_s29 + $0xe0] sm:$0xff] %v2457_v4  ;;  %v2458_v7 = vmul.f32 %v3557_v40, %v4430_v36  ;;  %3570 = vrcp.f32 %v2310_v19 }
 0x3ff   : > { %v3559_v52 = vpop.eup %3558  ;;  %v2312_v35 = vpop.xlane.xlu1 %2311 }
 0x400   : > { %2522 = vst [vmem:[%s4557_s29 + $0xe8] sm:$0xff] %v2458_v7  ;;  %v2463_v12 = vmul.f32 %v3559_v52, %v4434_v24  ;;  %3572 = vrcp.f32 %v2312_v35  ;;  %v4765_v7 = vld [vmem:[#allocation5_spill] sm:$0xff] }
 0x401   : > { %v3561_v10 = vpop.eup %3560  ;;  %v2322_v41 = vpop.xlane.xlu0 %2321 }
 0x402   : > { %2527 = vst [vmem:[%s4557_s29 + $0x110] sm:$0xff] %v2463_v12  ;;  %v2464_v16 = vmul.f32 %v3561_v10, %v4438_v26  ;;  %3574 = vrcp.f32 %v2322_v41  ;;  %v4766_v10 = vld [vmem:[#allocation6_spill] sm:$0xff] }
 0x403   : > { %v3563_v48 = vpop.eup %3562  ;;  %v2324_v33 = vpop.xlane.xlu1 %2323 }
 0x404   : > { %2528 = vst [vmem:[%s4557_s29 + $0x118] sm:$0xff] %v2464_v16  ;;  %v2461_v36 = vmul.f32 %v3563_v48, %v4442_v46  ;;  %3576 = vrcp.f32 %v2324_v33  ;;  %v4767_v33 = vld [vmem:[#allocation7_spill] sm:$0xff] }
 0x405   : > { %v3565_v42 = vpop.eup %3564  ;;  %v2318_v61 = vpop.xlane.xlu0 %2317 }
 0x406   : > { %2525 = vst [vmem:[%s4557_s29 + $0x100] sm:$0xff] %v2461_v36  ;;  %v2462_v24 = vmul.f32 %v3565_v42, %v4446_v37  ;;  %3578 = vrcp.f32 %v2318_v61 }
 0x407   : > { %v3567_v2 = vpop.eup %3566  ;;  %v2320_v43 = vpop.xlane.xlu1 %2319 }
 0x408   : > { %2526 = vst [vmem:[%s4557_s29 + $0x108] sm:$0xff] %v2462_v24  ;;  %v2467_v26 = vmul.f32 %v3567_v2, %v4450_v39  ;;  %3580 = vrcp.f32 %v2320_v43  ;;  %v4768_v24 = vld [vmem:[#allocation8_spill] sm:$0xff] }
 0x409   : > { %v3569_v3 = vpop.eup %3568  ;;  %v2330_v58 = vpop.xlane.xlu0 %2329 }
 0x40a   : > { %2531 = vst [vmem:[%s4557_s29 + $0x130] sm:$0xff] %v2467_v26  ;;  %v2468_v46 = vmul.f32 %v3569_v3, %v4454_v8  ;;  %3582 = vrcp.f32 %v2330_v58 }
 0x40b   : > { %v3571_v45 = vpop.eup %3570  ;;  %v2332_v25 = vpop.xlane.xlu1 %2331 }
 0x40c   : > { %2532 = vst [vmem:[%s4557_s29 + $0x138] sm:$0xff] %v2468_v46  ;;  %v2465_v37 = vmul.f32 %v3571_v45, %v4458_v47  ;;  %3584 = vrcp.f32 %v2332_v25 }
 0x40d   : > { %v3573_v38 = vpop.eup %3572  ;;  %v2326_v49 = vpop.xlane.xlu0 %2325 }
 0x40e   : > { %2529 = vst [vmem:[%s4557_s29 + $0x120] sm:$0xff] %v2465_v37  ;;  %v2466_v39 = vmul.f32 %v3573_v38, %v4462_v22  ;;  %3586 = vrcp.f32 %v2326_v49 }
 0x40f   : > { %v3575_v9 = vpop.eup %3574  ;;  %v2328_v28 = vpop.xlane.xlu1 %2327 }
 0x410   : > { %2530 = vst [vmem:[%s4557_s29 + $0x128] sm:$0xff] %v2466_v39  ;;  %v2471_v8 = vmul.f32 %v3575_v9, %v4466_v57  ;;  %3588 = vrcp.f32 %v2328_v28 }
 0x411   : > { %v3577_v32 = vpop.eup %3576  ;;  %v2338_v53 = vpop.xlane.xlu0 %2337 }
 0x412   : > { %2535 = vst [vmem:[%s4557_s29 + $0x150] sm:$0xff] %v2471_v8  ;;  %v2472_v47 = vmul.f32 %v3577_v32, %v4470_v60  ;;  %3590 = vrcp.f32 %v2338_v53  ;;  %v4769_v53 = vld [vmem:[#allocation9_spill] sm:$0xff] }
 0x413   : > { %v3579_v14 = vpop.eup %3578  ;;  %v2340_v54 = vpop.xlane.xlu1 %2339 }
 0x414   : > { %2536 = vst [vmem:[%s4557_s29 + $0x158] sm:$0xff] %v2472_v47  ;;  %v2469_v22 = vmul.f32 %v3579_v14, %v4474_v5  ;;  %3592 = vrcp.f32 %v2340_v54 }
 0x415   : > { %v3581_v31 = vpop.eup %3580  ;;  %v2334_v17 = vpop.xlane.xlu0 %2333 }
 0x416   : > { %2533 = vst [vmem:[%s4557_s29 + $0x140] sm:$0xff] %v2469_v22  ;;  %v2470_v57 = vmul.f32 %v3581_v31, %v4478_v13  ;;  %3594 = vrcp.f32 %v2334_v17  ;;  %v4762_v13 = vld [vmem:[#allocation2_spill] sm:$0xff]  ;;  %v4771_v31 = vld [vmem:[#allocation11_spill] sm:$0xff] }
 0x417   : > { %v3583_v56 = vpop.eup %3582  ;;  %v2336_v44 = vpop.xlane.xlu1 %2335 }
 0x418   : > { %2534 = vst [vmem:[%s4557_s29 + $0x148] sm:$0xff] %v2470_v57  ;;  %v2475_v60 = vmul.f32 %v3583_v56, %v4482_v27  ;;  %3596 = vrcp.f32 %v2336_v44  ;;  %v4763_v27 = vld [vmem:[#allocation3_spill] sm:$0xff] }
 0x419   : > { %v3585_v34 = vpop.eup %3584  ;;  %v2346_v51 = vpop.xlane.xlu0 %2345 }
 0x41a   : > { %2539 = vst [vmem:[%s4557_s29 + $0x170] sm:$0xff] %v2475_v60  ;;  %v2476_v5 = vmul.f32 %v3585_v34, %v4486_v6  ;;  %3598 = vrcp.f32 %v2346_v51  ;;  %v4764_v6 = vld [vmem:[#allocation4_spill] sm:$0xff] }
 0x41b   : > { %v3587_v50 = vpop.eup %3586  ;;  %v2348_v62 = vpop.xlane.xlu1 %2347 }
 0x41c   : > { %2540 = vst [vmem:[%s4557_s29 + $0x178] sm:$0xff] %v2476_v5  ;;  %v2473_v21 = vmul.f32 %v3587_v50, %v4762_v13  ;;  %3600 = vrcp.f32 %v2348_v62 }
 0x41d   : > { %v3589_v23 = vpop.eup %3588  ;;  %v2342_v30 = vpop.xlane.xlu0 %2341 }
 0x41e   : > { %2537 = vst [vmem:[%s4557_s29 + $0x160] sm:$0xff] %v2473_v21  ;;  %v2474_v63 = vmul.f32 %v3589_v23, %v4763_v27  ;;  %3602 = vrcp.f32 %v2342_v30 }
 0x41f   : > { %v3591_v20 = vpop.eup %3590  ;;  %v2344_v55 = vpop.xlane.xlu1 %2343 }
 0x420   : > { %2538 = vst [vmem:[%s4557_s29 + $0x168] sm:$0xff] %v2474_v63  ;;  %v2479_v4 = vmul.f32 %v3591_v20, %v4764_v6  ;;  %3604 = vrcp.f32 %v2344_v55 }
 0x421   : > { %v3593_v40 = vpop.eup %3592  ;;  %v2354_v19 = vpop.xlane.xlu0 %2353 }
 0x422   : > { %2543 = vst [vmem:[%s4557_s29 + $0x190] sm:$0xff] %v2479_v4  ;;  %v2480_v52 = vmul.f32 %v3593_v40, %v4765_v7  ;;  %3606 = vrcp.f32 %v2354_v19 }
 0x423   : > { %v3595_v35 = vpop.eup %3594  ;;  %v2356_v12 = vpop.xlane.xlu1 %2355 }
 0x424   : > { %2544 = vst [vmem:[%s4557_s29 + $0x198] sm:$0xff] %v2480_v52  ;;  %v2477_v41 = vmul.f32 %v3595_v35, %v4766_v10  ;;  %3608 = vrcp.f32 %v2356_v12 }
 0x425   : > { %v3597_v16 = vpop.eup %3596  ;;  %v2350_v48 = vpop.xlane.xlu0 %2349 }
 0x426   : > { %2541 = vst [vmem:[%s4557_s29 + $0x180] sm:$0xff] %v2477_v41  ;;  %v2478_v36 = vmul.f32 %v3597_v16, %v4767_v33  ;;  %3610 = vrcp.f32 %v2350_v48 }
 0x427   : > { %v3599_v42 = vpop.eup %3598  ;;  %v2352_v61 = vpop.xlane.xlu1 %2351 }
 0x428   : > { %2542 = vst [vmem:[%s4557_s29 + $0x188] sm:$0xff] %v2478_v36  ;;  %v2483_v2 = vmul.f32 %v3599_v42, %v4768_v24  ;;  %3612 = vrcp.f32 %v2352_v61 }
 0x429   : > { %v3601_v43 = vpop.eup %3600 }
 0x42a   : > { %2547 = vst [vmem:[%s4557_s29 + $0x1b0] sm:$0xff] %v2483_v2  ;;  %v2484_v26 = vmul.f32 %v3601_v43, %v4516_v59 }
 0x42b   : > { %v3603_v3 = vpop.eup %3602 }
 0x42c   : > { %2548 = vst [vmem:[%s4557_s29 + $0x1b8] sm:$0xff] %v2484_v26  ;;  %v2481_v58 = vmul.f32 %v3603_v3, %v4521_v11 }
 0x42d   : > { %v3605_v46 = vpop.eup %3604  ;;  %v2358_v45 = vpop.xlane.xlu0 %2357 }
 0x42e   : > { %2545 = vst [vmem:[%s4557_s29 + $0x1a0] sm:$0xff] %v2481_v58  ;;  %v2482_v25 = vmul.f32 %v3605_v46, %v4526_v18  ;;  %3614 = vrcp.f32 %v2358_v45 }
 0x42f   : > { %v3607_v37 = vpop.eup %3606  ;;  %v2360_v38 = vpop.xlane.xlu1 %2359 }
 0x430   : > { %2546 = vst [vmem:[%s4557_s29 + $0x1a8] sm:$0xff] %v2482_v25  ;;  %v2487_v49 = vmul.f32 %v3607_v37, %v4529_v1  ;;  %3616 = vrcp.f32 %v2360_v38 }
 0x431   : > { %v3609_v59 = vpop.eup %3608  ;;  %v2362_v39 = vpop.xlane.xlu0 %2361 }
 0x432   : > { %2551 = vst [vmem:[%s4557_s29 + $0x1d0] sm:$0xff] %v2487_v49  ;;  %v2488_v11 = vmul.f32 %v3609_v59, %v4532_v15  ;;  %3618 = vrcp.f32 %v2362_v39  ;;  %v4770_v15 = vld [vmem:[#allocation10_spill] sm:$0xff] }
 0x433   : > { %v3611_v9 = vpop.eup %3610  ;;  %v2364_v28 = vpop.xlane.xlu1 %2363 }
 0x434   : > { %2552 = vst [vmem:[%s4557_s29 + $0x1d8] sm:$0xff] %v2488_v11  ;;  %v2485_v18 = vmul.f32 %v3611_v9, %v4535_v0  ;;  %3620 = vrcp.f32 %v2364_v28  ;;  %v4772_v0 = vld [vmem:[#allocation12_spill] sm:$0xff] }
 0x435   : > { %v3613_v8 = vpop.eup %3612 }
 0x436   : > { %2549 = vst [vmem:[%s4557_s29 + $0x1c0] sm:$0xff] %v2485_v18  ;;  %v2486_v1 = vmul.f32 %v3613_v8, %v4538_v29 }
 0x438   : > { %2550 = vst [vmem:[%s4557_s29 + $0x1c8] sm:$0xff] %v2486_v1 }
 0x43b   : > { %v3615_v32 = vpop.eup %3614 }
 0x43c   : > { %v2489_v47 = vmul.f32 %v3615_v32, %v4769_v53 }
 0x43d   : > { %v3617_v14 = vpop.eup %3616 }
 0x43e   : > { %2553 = vst [vmem:[%s4557_s29 + $0x1e0] sm:$0xff] %v2489_v47  ;;  %v2490_v54 = vmul.f32 %v3617_v14, %v4770_v15 }
 0x43f   : > { %v3619_v22 = vpop.eup %3618 }
 0x440   : > { %2554 = vst [vmem:[%s4557_s29 + $0x1e8] sm:$0xff] %v2490_v54  ;;  %v2491_v17 = vmul.f32 %v3619_v22, %v4771_v31 }
 0x441   : > { %v3621_v57 = vpop.eup %3620 }
 0x442   : > { %2555 = vst [vmem:[%s4557_s29 + $0x1f0] sm:$0xff] %v2491_v17  ;;  %v2492_v56 = vmul.f32 %v3621_v57, %v4772_v0 }
 0x444   : > { %2556 = vst [vmem:[%s4557_s29 + $0x1f8] sm:$0xff] %v2492_v56 }
 0x445 PF: > { %s17_s24 = sadd.s32 1, %s3628_s24  }
 0x446   : > { %p14_p4 = scmp.ge.s32.totalorder %s17_s24, 6  }
 0x448   :  { %16 = sbr.rel (!%p14_p4) target bundleno = 1 (0x1), region = 78 }

</bundles_post_ra>
